<compile_context>
chip_gen: v7x
topology: tpu7x:2x2x1
jax: 0.10.0
libtpu: 0.0.40
codegen_flags: <defaults>
</compile_context>

<pallas_src>
import math
import numpy as np
import jax
import jax.numpy as jnp
from jax import lax
from jax.experimental import pallas as pl
from jax.experimental.pallas import tpu as pltpu

# ----- model config (small, consistent with DiTBlock(hidden_size, num_heads)) -----
B = 2            # batch
N = 16           # sequence length (num tokens)
D = 32           # hidden_size
NUM_HEADS = 4
HEAD_DIM = D // NUM_HEADS
MLP_RATIO = 4.0
MLP_H = int(D * MLP_RATIO)
EPS = 1e-6
M = B * N        # flattened matmul M dimension


def _layernorm(x, eps=EPS):
    # elementwise_affine=False LayerNorm over last dim (f32 VPU math)
    mu = jnp.mean(x, axis=-1, keepdims=True)
    xc = x - mu
    var = jnp.mean(xc * xc, axis=-1, keepdims=True)
    return xc * jax.lax.rsqrt(var + eps)


def _gelu_tanh(x):
    # GELU(approximate='tanh'), f32
    c = math.sqrt(2.0 / math.pi)
    return 0.5 * x * (1.0 + jnp.tanh(c * (x + 0.044715 * x * x * x)))


def dit_block_kernel(
    x_ref,            # (M, D)        f32
    mods_ref,         # (6, M, D)     f32  (shift_msa, scale_msa, gate_msa, shift_mlp, scale_mlp, gate_mlp)
    wqkv_ref,         # (D, 3D)       matmul dtype (softmax scale folded into Q cols)
    bqkv_ref,         # (1, 3D)       f32
    wproj_ref,        # (D, D)        matmul dtype
    bproj_ref,        # (1, D)        f32
    wfc1_ref,         # (D, MLP_H)    matmul dtype
    bfc1_ref,         # (1, MLP_H)    f32
    wfc2_ref,         # (MLP_H, D)    matmul dtype
    bfc2_ref,         # (1, D)        f32
    out_ref,          # (M, D)
):
    cdt = wqkv_ref.dtype                       # matmul operand dtype (bf16 or f32)

    x = x_ref[...].astype(jnp.float32)         # (M, D)

    shift_msa = mods_ref[0]                    # (M, D) — pre-broadcast in the wrapper
    scale_msa = mods_ref[1]
    gate_msa = mods_ref[2]
    shift_mlp = mods_ref[3]
    scale_mlp = mods_ref[4]
    gate_mlp = mods_ref[5]

    # ---- attention branch ----
    xm = _layernorm(x) * (1.0 + scale_msa) + shift_msa                  # (M, D), f32
    qkv = jnp.dot(xm.astype(cdt), wqkv_ref[...],
                  preferred_element_type=jnp.float32) + bqkv_ref[...]   # (M, 3D), f32
    qkv_c = qkv.astype(cdt)                                             # bf16 operands for score/PV

    # score / softmax / PV: small static (batch, head) loop; slices are cheap
    # 8-lane lane-selections, MXU does (N,hd)x(hd,N) and (N,N)x(N,hd).
    o_rows = []
    for b in range(B):
        q_b = qkv_c[b * N:(b + 1) * N, 0 * D:1 * D]                     # (N, D)
        k_b = qkv_c[b * N:(b + 1) * N, 1 * D:2 * D]
        v_b = qkv_c[b * N:(b + 1) * N, 2 * D:3 * D]
        o_heads = []
        for h in range(NUM_HEADS):
            qh = q_b[:, h * HEAD_DIM:(h + 1) * HEAD_DIM]                # (N, hd)
            kh = k_b[:, h * HEAD_DIM:(h + 1) * HEAD_DIM]
            vh = v_b[:, h * HEAD_DIM:(h + 1) * HEAD_DIM]

            # contract last dims directly (no explicit kh.T relayout)
            att = lax.dot_general(qh, kh, (((1,), (1,)), ((), ())),
                                  preferred_element_type=jnp.float32)   # (N, N) f32
            att = att - jnp.max(att, axis=-1, keepdims=True)
            p = jnp.exp(att)
            p = p * pl.reciprocal(jnp.sum(p, axis=-1, keepdims=True), approx=True)
            oh = jnp.dot(p.astype(cdt), vh,
                         preferred_element_type=jnp.float32)            # (N, hd) f32
            o_heads.append(oh)
        o_rows.append(jnp.concatenate(o_heads, axis=-1))                # (N, D)
    o = jnp.concatenate(o_rows, axis=0)                                 # (M, D)

    # single output projection over all heads and batches
    attn_out = jnp.dot(o.astype(cdt), wproj_ref[...],
                       preferred_element_type=jnp.float32) + bproj_ref[...]
    x1 = x + gate_msa * attn_out                                        # (M, D)

    # ---- MLP branch ----
    x2m = _layernorm(x1) * (1.0 + scale_mlp) + shift_mlp
    h1 = jnp.dot(x2m.astype(cdt), wfc1_ref[...],
                 preferred_element_type=jnp.float32) + bfc1_ref[...]    # (M, MLP_H)
    h1 = _gelu_tanh(h1)
    h2 = jnp.dot(h1.astype(cdt), wfc2_ref[...],
                 preferred_element_type=jnp.float32) + bfc2_ref[...]    # (M, D)

    out_ref[...] = (x1 + gate_mlp * h2).astype(out_ref.dtype)           # one lane-dense store


def prepare_kernel_params(raw, matmul_dtype=jnp.bfloat16):
    """One-time transform of the module parameters into the kernel layout.

    * QKV stays fused as one (D, 3D) weight / (1, 3D) bias; the softmax scale
      (head_dim**-0.5) is folded into the Q columns and Q bias.
    * Matmul weights are stored in `matmul_dtype` (bf16 runs the MXU at full
      rate on v5e/v6e/v7x); biases stay f32 (added after the f32-accumulated dot).
    """
    (wada, bada, wqkv, bqkv, wproj, bproj, wfc1, bfc1, wfc2, bfc2) = raw
    sm_scale = HEAD_DIM ** -0.5

    q_col_scale = jnp.concatenate(
        [jnp.full((1, D), sm_scale, jnp.float32), jnp.ones((1, 2 * D), jnp.float32)],
        axis=1)                                           # (1, 3D)
    wqkv_s = wqkv * q_col_scale
    bqkv_s = bqkv * q_col_scale

    kernel_params = (
        wqkv_s.astype(matmul_dtype), bqkv_s.astype(jnp.float32),
        wproj.astype(matmul_dtype), bproj.astype(jnp.float32),
        wfc1.astype(matmul_dtype), bfc1.astype(jnp.float32),
        wfc2.astype(matmul_dtype), bfc2.astype(jnp.float32),
    )
    ada_params = (wada, bada)
    return ada_params, kernel_params


def dit_block(x, c, ada_params, kernel_params):
    # adaLN modulation is O(B*D*6D) per call (not per token): keep it in plain
    # XLA; hand the kernel ONE (6, B*N, D) modulation array (single DMA), with
    # the token broadcast done once here rather than per-unrolled-iteration.
    wada, bada = ada_params
    c_silu = c * jax.nn.sigmoid(c)
    mod = jnp.dot(c_silu, wada) + bada                     # (B, 6D), f32
    mods = jnp.stack(jnp.split(mod, 6, axis=-1), axis=0)   # (6, B, D)
    mods_mn = jnp.broadcast_to(mods[:, :, None, :], (6, B, N, D)).reshape(6, M, D)

    x_flat = x.reshape(M, D)

    inputs = (x_flat, mods_mn, *kernel_params)             # 10 inputs (was 19)
    vmem = pl.BlockSpec(memory_space=pltpu.MemorySpace.VMEM)
    out = pl.pallas_call(
        dit_block_kernel,
        out_shape=jax.ShapeDtypeStruct((M, D), x.dtype),
        in_specs=[vmem] * len(inputs),
        out_specs=vmem,
    )(*inputs)
    return out.reshape(B, N, D)


# ---------------- pure-JAX reference (original f32 semantics) ----------------
def dit_block_ref(x, c, params):
    (wada, bada, wqkv, bqkv, wproj, bproj, wfc1, bfc1, wfc2, bfc2) = params
    c_silu = c * jax.nn.sigmoid(c)
    mod = c_silu @ wada + bada[0]
    shift_msa, scale_msa, gate_msa, shift_mlp, scale_mlp, gate_mlp = jnp.split(mod, 6, axis=1)

    def ln(v):
        mu = jnp.mean(v, axis=-1, keepdims=True)
        var = jnp.mean((v - mu) ** 2, axis=-1, keepdims=True)
        return (v - mu) / jnp.sqrt(var + EPS)

    def modulate(v, sh, sc):
        return v * (1.0 + sc[:, None, :]) + sh[:, None, :]

    xm = modulate(ln(x), shift_msa, scale_msa)
    qkv = xm @ wqkv + bqkv[0]
    q, k, v = jnp.split(qkv, 3, axis=-1)
    q = q.reshape(B, N, NUM_HEADS, HEAD_DIM).transpose(0, 2, 1, 3)
    k = k.reshape(B, N, NUM_HEADS, HEAD_DIM).transpose(0, 2, 1, 3)
    v = v.reshape(B, N, NUM_HEADS, HEAD_DIM).transpose(0, 2, 1, 3)
    att = jax.nn.softmax((q * HEAD_DIM ** -0.5) @ jnp.swapaxes(k, -1, -2), axis=-1)
    o = (att @ v).transpose(0, 2, 1, 3).reshape(B, N, D)
    o = o @ wproj + bproj[0]
    x1 = x + gate_msa[:, None, :] * o

    x2m = modulate(ln(x1), shift_mlp, scale_mlp)
    h = x2m @ wfc1 + bfc1[0]
    h = 0.5 * h * (1.0 + jnp.tanh(math.sqrt(2.0 / math.pi) * (h + 0.044715 * h ** 3)))
    h = h @ wfc2 + bfc2[0]
    return x1 + gate_mlp[:, None, :] * h


if __name__ == "__main__":
    key = jax.random.PRNGKey(0)
    ks = jax.random.split(key, 12)

    x = jax.random.normal(ks[0], (B, N, D), dtype=jnp.float32)
    c = jax.random.normal(ks[1], (B, D), dtype=jnp.float32)

    def lin(kw, kb, fan_in, fan_out):
        w = jax.random.normal(kw, (fan_in, fan_out), dtype=jnp.float32) * (1.0 / math.sqrt(fan_in))
        b = jax.random.normal(kb, (1, fan_out), dtype=jnp.float32) * 0.01
        return w, b

    wada, bada = lin(ks[2], ks[3], D, 6 * D)        # adaLN_modulation Linear
    wqkv, bqkv = lin(ks[4], ks[5], D, 3 * D)        # attn.qkv (qkv_bias=True)
    wproj, bproj = lin(ks[6], ks[7], D, D)          # attn.proj
    wfc1, bfc1 = lin(ks[8], ks[9], D, MLP_H)        # mlp.fc1
    wfc2, bfc2 = lin(ks[10], ks[11], MLP_H, D)      # mlp.fc2
    raw = (wada, bada, wqkv, bqkv, wproj, bproj, wfc1, bfc1, wfc2, bfc2)

    ref = dit_block_ref(x, c, raw)
    run = jax.jit(dit_block)

    # 1) f32 weights: validates the restructured kernel against the reference.
    ada, kp32 = prepare_kernel_params(raw, matmul_dtype=jnp.float32)
    out32 = jax.block_until_ready(run(x, c, ada, kp32))
    np.testing.assert_allclose(np.asarray(out32), np.asarray(ref), rtol=1e-2, atol=1e-2)

    # 2) bf16 matmul operands (all TPU generations), f32 accumulation + f32 VPU/EUP math.
    ada, kp16 = prepare_kernel_params(raw, matmul_dtype=jnp.bfloat16)
    out16 = jax.block_until_ready(run(x, c, ada, kp16))
    np.testing.assert_allclose(np.asarray(out16), np.asarray(ref), rtol=5e-2, atol=5e-2)

    print("KERNEL_OK")
</pallas_src>

<mosaic_0001>
module attributes {stable_mosaic.version = 11 : i64} {
  func.func @dit_block_kernel(%arg0: memref<32x32xf32, #tpu.memory_space<vmem>>, %arg1: memref<6x32x32xf32, #tpu.memory_space<vmem>>, %arg2: memref<32x96xf32, #tpu.memory_space<vmem>>, %arg3: memref<1x96xf32, #tpu.memory_space<vmem>>, %arg4: memref<32x32xf32, #tpu.memory_space<vmem>>, %arg5: memref<1x32xf32, #tpu.memory_space<vmem>>, %arg6: memref<32x128xf32, #tpu.memory_space<vmem>>, %arg7: memref<1x128xf32, #tpu.memory_space<vmem>>, %arg8: memref<128x32xf32, #tpu.memory_space<vmem>>, %arg9: memref<1x32xf32, #tpu.memory_space<vmem>>, %arg10: memref<32x32xf32, #tpu.memory_space<vmem>>) attributes {dimension_semantics = [], scalar_prefetch = 0 : i64, scratch_operands = 0 : i64, tpu.core_type = #tpu.core_type<tc>} {
    %c0 = arith.constant 0 : index
    %c0_0 = arith.constant 0 : index
    %0 = vector.load %arg0[%c0, %c0_0] : memref<32x32xf32, #tpu.memory_space<vmem>>, vector<32x32xf32>
    %c0_1 = arith.constant 0 : index
    %c0_2 = arith.constant 0 : index
    %c0_3 = arith.constant 0 : index
    %1 = vector.load %arg1[%c0_1, %c0_2, %c0_3] : memref<6x32x32xf32, #tpu.memory_space<vmem>>, vector<1x32x32xf32>
    %2 = vector.shape_cast %1 : vector<1x32x32xf32> to vector<32x32xf32>
    %c1 = arith.constant 1 : index
    %c0_4 = arith.constant 0 : index
    %c0_5 = arith.constant 0 : index
    %3 = vector.load %arg1[%c1, %c0_4, %c0_5] : memref<6x32x32xf32, #tpu.memory_space<vmem>>, vector<1x32x32xf32>
    %4 = vector.shape_cast %3 : vector<1x32x32xf32> to vector<32x32xf32>
    %c2 = arith.constant 2 : index
    %c0_6 = arith.constant 0 : index
    %c0_7 = arith.constant 0 : index
    %5 = vector.load %arg1[%c2, %c0_6, %c0_7] : memref<6x32x32xf32, #tpu.memory_space<vmem>>, vector<1x32x32xf32>
    %6 = vector.shape_cast %5 : vector<1x32x32xf32> to vector<32x32xf32>
    %c3 = arith.constant 3 : index
    %c0_8 = arith.constant 0 : index
    %c0_9 = arith.constant 0 : index
    %7 = vector.load %arg1[%c3, %c0_8, %c0_9] : memref<6x32x32xf32, #tpu.memory_space<vmem>>, vector<1x32x32xf32>
    %8 = vector.shape_cast %7 : vector<1x32x32xf32> to vector<32x32xf32>
    %c4 = arith.constant 4 : index
    %c0_10 = arith.constant 0 : index
    %c0_11 = arith.constant 0 : index
    %9 = vector.load %arg1[%c4, %c0_10, %c0_11] : memref<6x32x32xf32, #tpu.memory_space<vmem>>, vector<1x32x32xf32>
    %10 = vector.shape_cast %9 : vector<1x32x32xf32> to vector<32x32xf32>
    %c5 = arith.constant 5 : index
    %c0_12 = arith.constant 0 : index
    %c0_13 = arith.constant 0 : index
    %11 = vector.load %arg1[%c5, %c0_12, %c0_13] : memref<6x32x32xf32, #tpu.memory_space<vmem>>, vector<1x32x32xf32>
    %12 = vector.shape_cast %11 : vector<1x32x32xf32> to vector<32x32xf32>
    %cst = arith.constant dense<0.000000e+00> : vector<32xf32>
    %13 = vector.multi_reduction <add>, %0, %cst [1] : vector<32x32xf32> to vector<32xf32>
    %14 = vector.shape_cast %13 : vector<32xf32> to vector<32x1xf32>
    %cst_14 = arith.constant 3.200000e+01 : f32
    %15 = vector.broadcast %cst_14 : f32 to vector<32x1xf32>
    %16 = arith.divf %14, %15 : vector<32x1xf32>
    %17 = vector.broadcast %16 : vector<32x1xf32> to vector<32x32xf32>
    %18 = arith.subf %0, %17 : vector<32x32xf32>
    %19 = arith.mulf %18, %18 : vector<32x32xf32>
    %cst_15 = arith.constant dense<0.000000e+00> : vector<32xf32>
    %20 = vector.multi_reduction <add>, %19, %cst_15 [1] : vector<32x32xf32> to vector<32xf32>
    %21 = vector.shape_cast %20 : vector<32xf32> to vector<32x1xf32>
    %cst_16 = arith.constant 3.200000e+01 : f32
    %22 = vector.broadcast %cst_16 : f32 to vector<32x1xf32>
    %23 = arith.divf %21, %22 : vector<32x1xf32>
    %cst_17 = arith.constant 9.99999997E-7 : f32
    %24 = vector.broadcast %cst_17 : f32 to vector<32x1xf32>
    %25 = arith.addf %23, %24 : vector<32x1xf32>
    %26 = math.rsqrt %25 : vector<32x1xf32>
    %27 = vector.broadcast %26 : vector<32x1xf32> to vector<32x32xf32>
    %28 = arith.mulf %18, %27 : vector<32x32xf32>
    %cst_18 = arith.constant 1.000000e+00 : f32
    %29 = vector.broadcast %cst_18 : f32 to vector<32x32xf32>
    %30 = arith.addf %29, %4 : vector<32x32xf32>
    %31 = arith.mulf %28, %30 : vector<32x32xf32>
    %32 = arith.addf %31, %2 : vector<32x32xf32>
    %c0_19 = arith.constant 0 : index
    %c0_20 = arith.constant 0 : index
    %33 = vector.load %arg2[%c0_19, %c0_20] : memref<32x96xf32, #tpu.memory_space<vmem>>, vector<32x96xf32>
    %cst_21 = arith.constant dense<0.000000e+00> : vector<32x96xf32>
    %34 = tpu.matmul %32, %33, %cst_21 {dimension_numbers = #tpu.dot_dimension_numbers<[1], [0], [0], [1], [0, 0, 1, 1], [], []>} : vector<32x32xf32>, vector<32x96xf32>, vector<32x96xf32> -> vector<32x96xf32>
    %c0_22 = arith.constant 0 : index
    %c0_23 = arith.constant 0 : index
    %35 = vector.load %arg3[%c0_22, %c0_23] : memref<1x96xf32, #tpu.memory_space<vmem>>, vector<1x96xf32>
    %36 = vector.broadcast %35 : vector<1x96xf32> to vector<32x96xf32>
    %37 = arith.addf %34, %36 : vector<32x96xf32>
    %38 = vector.extract_strided_slice %37 {offsets = [0, 0], sizes = [16, 32], strides = [1, 1]} : vector<32x96xf32> to vector<16x32xf32>
    %39 = vector.extract_strided_slice %37 {offsets = [0, 32], sizes = [16, 32], strides = [1, 1]} : vector<32x96xf32> to vector<16x32xf32>
    %40 = vector.extract_strided_slice %37 {offsets = [0, 64], sizes = [16, 32], strides = [1, 1]} : vector<32x96xf32> to vector<16x32xf32>
    %41 = vector.extract_strided_slice %38 {offsets = [0, 0], sizes = [16, 8], strides = [1, 1]} : vector<16x32xf32> to vector<16x8xf32>
    %42 = vector.extract_strided_slice %39 {offsets = [0, 0], sizes = [16, 8], strides = [1, 1]} : vector<16x32xf32> to vector<16x8xf32>
    %43 = vector.extract_strided_slice %40 {offsets = [0, 0], sizes = [16, 8], strides = [1, 1]} : vector<16x32xf32> to vector<16x8xf32>
    %cst_24 = arith.constant dense<0.000000e+00> : vector<16x16xf32>
    %44 = tpu.matmul %41, %42, %cst_24 {dimension_numbers = #tpu.dot_dimension_numbers<[1], [1], [0], [0], [0, 0, 1, 0], [], []>} : vector<16x8xf32>, vector<16x8xf32>, vector<16x16xf32> -> vector<16x16xf32>
    %cst_25 = arith.constant dense<0xFF800000> : vector<16xf32>
    %45 = vector.multi_reduction <maximumf>, %44, %cst_25 [1] : vector<16x16xf32> to vector<16xf32>
    %46 = vector.shape_cast %45 : vector<16xf32> to vector<16x1xf32>
    %47 = vector.broadcast %46 : vector<16x1xf32> to vector<16x16xf32>
    %48 = arith.subf %44, %47 : vector<16x16xf32>
    %49 = math.exp %48 : vector<16x16xf32>
    %cst_26 = arith.constant dense<0.000000e+00> : vector<16xf32>
    %50 = vector.multi_reduction <add>, %49, %cst_26 [1] : vector<16x16xf32> to vector<16xf32>
    %51 = vector.shape_cast %50 : vector<16xf32> to vector<16x1xf32>
    %52 = tpu.reciprocal %51 {approx = true} : vector<16x1xf32> -> vector<16x1xf32>
    %53 = vector.broadcast %52 : vector<16x1xf32> to vector<16x16xf32>
    %54 = arith.mulf %49, %53 : vector<16x16xf32>
    %cst_27 = arith.constant dense<0.000000e+00> : vector<16x8xf32>
    %55 = tpu.matmul %54, %43, %cst_27 {dimension_numbers = #tpu.dot_dimension_numbers<[1], [0], [0], [1], [0, 0, 1, 1], [], []>} : vector<16x16xf32>, vector<16x8xf32>, vector<16x8xf32> -> vector<16x8xf32>
    %56 = vector.extract_strided_slice %38 {offsets = [0, 8], sizes = [16, 8], strides = [1, 1]} : vector<16x32xf32> to vector<16x8xf32>
    %57 = vector.extract_strided_slice %39 {offsets = [0, 8], sizes = [16, 8], strides = [1, 1]} : vector<16x32xf32> to vector<16x8xf32>
    %58 = vector.extract_strided_slice %40 {offsets = [0, 8], sizes = [16, 8], strides = [1, 1]} : vector<16x32xf32> to vector<16x8xf32>
    %cst_28 = arith.constant dense<0.000000e+00> : vector<16x16xf32>
    %59 = tpu.matmul %56, %57, %cst_28 {dimension_numbers = #tpu.dot_dimension_numbers<[1], [1], [0], [0], [0, 0, 1, 0], [], []>} : vector<16x8xf32>, vector<16x8xf32>, vector<16x16xf32> -> vector<16x16xf32>
    %cst_29 = arith.constant dense<0xFF800000> : vector<16xf32>
    %60 = vector.multi_reduction <maximumf>, %59, %cst_29 [1] : vector<16x16xf32> to vector<16xf32>
    %61 = vector.shape_cast %60 : vector<16xf32> to vector<16x1xf32>
    %62 = vector.broadcast %61 : vector<16x1xf32> to vector<16x16xf32>
    %63 = arith.subf %59, %62 : vector<16x16xf32>
    %64 = math.exp %63 : vector<16x16xf32>
    %cst_30 = arith.constant dense<0.000000e+00> : vector<16xf32>
    %65 = vector.multi_reduction <add>, %64, %cst_30 [1] : vector<16x16xf32> to vector<16xf32>
    %66 = vector.shape_cast %65 : vector<16xf32> to vector<16x1xf32>
    %67 = tpu.reciprocal %66 {approx = true} : vector<16x1xf32> -> vector<16x1xf32>
    %68 = vector.broadcast %67 : vector<16x1xf32> to vector<16x16xf32>
    %69 = arith.mulf %64, %68 : vector<16x16xf32>
    %cst_31 = arith.constant dense<0.000000e+00> : vector<16x8xf32>
    %70 = tpu.matmul %69, %58, %cst_31 {dimension_numbers = #tpu.dot_dimension_numbers<[1], [0], [0], [1], [0, 0, 1, 1], [], []>} : vector<16x16xf32>, vector<16x8xf32>, vector<16x8xf32> -> vector<16x8xf32>
    %71 = vector.extract_strided_slice %38 {offsets = [0, 16], sizes = [16, 8], strides = [1, 1]} : vector<16x32xf32> to vector<16x8xf32>
    %72 = vector.extract_strided_slice %39 {offsets = [0, 16], sizes = [16, 8], strides = [1, 1]} : vector<16x32xf32> to vector<16x8xf32>
    %73 = vector.extract_strided_slice %40 {offsets = [0, 16], sizes = [16, 8], strides = [1, 1]} : vector<16x32xf32> to vector<16x8xf32>
    %cst_32 = arith.constant dense<0.000000e+00> : vector<16x16xf32>
    %74 = tpu.matmul %71, %72, %cst_32 {dimension_numbers = #tpu.dot_dimension_numbers<[1], [1], [0], [0], [0, 0, 1, 0], [], []>} : vector<16x8xf32>, vector<16x8xf32>, vector<16x16xf32> -> vector<16x16xf32>
    %cst_33 = arith.constant dense<0xFF800000> : vector<16xf32>
    %75 = vector.multi_reduction <maximumf>, %74, %cst_33 [1] : vector<16x16xf32> to vector<16xf32>
    %76 = vector.shape_cast %75 : vector<16xf32> to vector<16x1xf32>
    %77 = vector.broadcast %76 : vector<16x1xf32> to vector<16x16xf32>
    %78 = arith.subf %74, %77 : vector<16x16xf32>
    %79 = math.exp %78 : vector<16x16xf32>
    %cst_34 = arith.constant dense<0.000000e+00> : vector<16xf32>
    %80 = vector.multi_reduction <add>, %79, %cst_34 [1] : vector<16x16xf32> to vector<16xf32>
    %81 = vector.shape_cast %80 : vector<16xf32> to vector<16x1xf32>
    %82 = tpu.reciprocal %81 {approx = true} : vector<16x1xf32> -> vector<16x1xf32>
    %83 = vector.broadcast %82 : vector<16x1xf32> to vector<16x16xf32>
    %84 = arith.mulf %79, %83 : vector<16x16xf32>
    %cst_35 = arith.constant dense<0.000000e+00> : vector<16x8xf32>
    %85 = tpu.matmul %84, %73, %cst_35 {dimension_numbers = #tpu.dot_dimension_numbers<[1], [0], [0], [1], [0, 0, 1, 1], [], []>} : vector<16x16xf32>, vector<16x8xf32>, vector<16x8xf32> -> vector<16x8xf32>
    %86 = vector.extract_strided_slice %38 {offsets = [0, 24], sizes = [16, 8], strides = [1, 1]} : vector<16x32xf32> to vector<16x8xf32>
    %87 = vector.extract_strided_slice %39 {offsets = [0, 24], sizes = [16, 8], strides = [1, 1]} : vector<16x32xf32> to vector<16x8xf32>
    %88 = vector.extract_strided_slice %40 {offsets = [0, 24], sizes = [16, 8], strides = [1, 1]} : vector<16x32xf32> to vector<16x8xf32>
    %cst_36 = arith.constant dense<0.000000e+00> : vector<16x16xf32>
    %89 = tpu.matmul %86, %87, %cst_36 {dimension_numbers = #tpu.dot_dimension_numbers<[1], [1], [0], [0], [0, 0, 1, 0], [], []>} : vector<16x8xf32>, vector<16x8xf32>, vector<16x16xf32> -> vector<16x16xf32>
    %cst_37 = arith.constant dense<0xFF800000> : vector<16xf32>
    %90 = vector.multi_reduction <maximumf>, %89, %cst_37 [1] : vector<16x16xf32> to vector<16xf32>
    %91 = vector.shape_cast %90 : vector<16xf32> to vector<16x1xf32>
    %92 = vector.broadcast %91 : vector<16x1xf32> to vector<16x16xf32>
    %93 = arith.subf %89, %92 : vector<16x16xf32>
    %94 = math.exp %93 : vector<16x16xf32>
    %cst_38 = arith.constant dense<0.000000e+00> : vector<16xf32>
    %95 = vector.multi_reduction <add>, %94, %cst_38 [1] : vector<16x16xf32> to vector<16xf32>
    %96 = vector.shape_cast %95 : vector<16xf32> to vector<16x1xf32>
    %97 = tpu.reciprocal %96 {approx = true} : vector<16x1xf32> -> vector<16x1xf32>
    %98 = vector.broadcast %97 : vector<16x1xf32> to vector<16x16xf32>
    %99 = arith.mulf %94, %98 : vector<16x16xf32>
    %cst_39 = arith.constant dense<0.000000e+00> : vector<16x8xf32>
    %100 = tpu.matmul %99, %88, %cst_39 {dimension_numbers = #tpu.dot_dimension_numbers<[1], [0], [0], [1], [0, 0, 1, 1], [], []>} : vector<16x16xf32>, vector<16x8xf32>, vector<16x8xf32> -> vector<16x8xf32>
    %101 = tpu.concatenate %55, %70, %85, %100 in 1 : vector<16x8xf32>, vector<16x8xf32>, vector<16x8xf32>, vector<16x8xf32> -> vector<16x32xf32>
    %102 = vector.extract_strided_slice %37 {offsets = [16, 0], sizes = [16, 32], strides = [1, 1]} : vector<32x96xf32> to vector<16x32xf32>
    %103 = vector.extract_strided_slice %37 {offsets = [16, 32], sizes = [16, 32], strides = [1, 1]} : vector<32x96xf32> to vector<16x32xf32>
    %104 = vector.extract_strided_slice %37 {offsets = [16, 64], sizes = [16, 32], strides = [1, 1]} : vector<32x96xf32> to vector<16x32xf32>
    %105 = vector.extract_strided_slice %102 {offsets = [0, 0], sizes = [16, 8], strides = [1, 1]} : vector<16x32xf32> to vector<16x8xf32>
    %106 = vector.extract_strided_slice %103 {offsets = [0, 0], sizes = [16, 8], strides = [1, 1]} : vector<16x32xf32> to vector<16x8xf32>
    %107 = vector.extract_strided_slice %104 {offsets = [0, 0], sizes = [16, 8], strides = [1, 1]} : vector<16x32xf32> to vector<16x8xf32>
    %cst_40 = arith.constant dense<0.000000e+00> : vector<16x16xf32>
    %108 = tpu.matmul %105, %106, %cst_40 {dimension_numbers = #tpu.dot_dimension_numbers<[1], [1], [0], [0], [0, 0, 1, 0], [], []>} : vector<16x8xf32>, vector<16x8xf32>, vector<16x16xf32> -> vector<16x16xf32>
    %cst_41 = arith.constant dense<0xFF800000> : vector<16xf32>
    %109 = vector.multi_reduction <maximumf>, %108, %cst_41 [1] : vector<16x16xf32> to vector<16xf32>
    %110 = vector.shape_cast %109 : vector<16xf32> to vector<16x1xf32>
    %111 = vector.broadcast %110 : vector<16x1xf32> to vector<16x16xf32>
    %112 = arith.subf %108, %111 : vector<16x16xf32>
    %113 = math.exp %112 : vector<16x16xf32>
    %cst_42 = arith.constant dense<0.000000e+00> : vector<16xf32>
    %114 = vector.multi_reduction <add>, %113, %cst_42 [1] : vector<16x16xf32> to vector<16xf32>
    %115 = vector.shape_cast %114 : vector<16xf32> to vector<16x1xf32>
    %116 = tpu.reciprocal %115 {approx = true} : vector<16x1xf32> -> vector<16x1xf32>
    %117 = vector.broadcast %116 : vector<16x1xf32> to vector<16x16xf32>
    %118 = arith.mulf %113, %117 : vector<16x16xf32>
    %cst_43 = arith.constant dense<0.000000e+00> : vector<16x8xf32>
    %119 = tpu.matmul %118, %107, %cst_43 {dimension_numbers = #tpu.dot_dimension_numbers<[1], [0], [0], [1], [0, 0, 1, 1], [], []>} : vector<16x16xf32>, vector<16x8xf32>, vector<16x8xf32> -> vector<16x8xf32>
    %120 = vector.extract_strided_slice %102 {offsets = [0, 8], sizes = [16, 8], strides = [1, 1]} : vector<16x32xf32> to vector<16x8xf32>
    %121 = vector.extract_strided_slice %103 {offsets = [0, 8], sizes = [16, 8], strides = [1, 1]} : vector<16x32xf32> to vector<16x8xf32>
    %122 = vector.extract_strided_slice %104 {offsets = [0, 8], sizes = [16, 8], strides = [1, 1]} : vector<16x32xf32> to vector<16x8xf32>
    %cst_44 = arith.constant dense<0.000000e+00> : vector<16x16xf32>
    %123 = tpu.matmul %120, %121, %cst_44 {dimension_numbers = #tpu.dot_dimension_numbers<[1], [1], [0], [0], [0, 0, 1, 0], [], []>} : vector<16x8xf32>, vector<16x8xf32>, vector<16x16xf32> -> vector<16x16xf32>
    %cst_45 = arith.constant dense<0xFF800000> : vector<16xf32>
    %124 = vector.multi_reduction <maximumf>, %123, %cst_45 [1] : vector<16x16xf32> to vector<16xf32>
    %125 = vector.shape_cast %124 : vector<16xf32> to vector<16x1xf32>
    %126 = vector.broadcast %125 : vector<16x1xf32> to vector<16x16xf32>
    %127 = arith.subf %123, %126 : vector<16x16xf32>
    %128 = math.exp %127 : vector<16x16xf32>
    %cst_46 = arith.constant dense<0.000000e+00> : vector<16xf32>
    %129 = vector.multi_reduction <add>, %128, %cst_46 [1] : vector<16x16xf32> to vector<16xf32>
    %130 = vector.shape_cast %129 : vector<16xf32> to vector<16x1xf32>
    %131 = tpu.reciprocal %130 {approx = true} : vector<16x1xf32> -> vector<16x1xf32>
    %132 = vector.broadcast %131 : vector<16x1xf32> to vector<16x16xf32>
    %133 = arith.mulf %128, %132 : vector<16x16xf32>
    %cst_47 = arith.constant dense<0.000000e+00> : vector<16x8xf32>
    %134 = tpu.matmul %133, %122, %cst_47 {dimension_numbers = #tpu.dot_dimension_numbers<[1], [0], [0], [1], [0, 0, 1, 1], [], []>} : vector<16x16xf32>, vector<16x8xf32>, vector<16x8xf32> -> vector<16x8xf32>
    %135 = vector.extract_strided_slice %102 {offsets = [0, 16], sizes = [16, 8], strides = [1, 1]} : vector<16x32xf32> to vector<16x8xf32>
    %136 = vector.extract_strided_slice %103 {offsets = [0, 16], sizes = [16, 8], strides = [1, 1]} : vector<16x32xf32> to vector<16x8xf32>
    %137 = vector.extract_strided_slice %104 {offsets = [0, 16], sizes = [16, 8], strides = [1, 1]} : vector<16x32xf32> to vector<16x8xf32>
    %cst_48 = arith.constant dense<0.000000e+00> : vector<16x16xf32>
    %138 = tpu.matmul %135, %136, %cst_48 {dimension_numbers = #tpu.dot_dimension_numbers<[1], [1], [0], [0], [0, 0, 1, 0], [], []>} : vector<16x8xf32>, vector<16x8xf32>, vector<16x16xf32> -> vector<16x16xf32>
    %cst_49 = arith.constant dense<0xFF800000> : vector<16xf32>
    %139 = vector.multi_reduction <maximumf>, %138, %cst_49 [1] : vector<16x16xf32> to vector<16xf32>
    %140 = vector.shape_cast %139 : vector<16xf32> to vector<16x1xf32>
    %141 = vector.broadcast %140 : vector<16x1xf32> to vector<16x16xf32>
    %142 = arith.subf %138, %141 : vector<16x16xf32>
    %143 = math.exp %142 : vector<16x16xf32>
    %cst_50 = arith.constant dense<0.000000e+00> : vector<16xf32>
    %144 = vector.multi_reduction <add>, %143, %cst_50 [1] : vector<16x16xf32> to vector<16xf32>
    %145 = vector.shape_cast %144 : vector<16xf32> to vector<16x1xf32>
    %146 = tpu.reciprocal %145 {approx = true} : vector<16x1xf32> -> vector<16x1xf32>
    %147 = vector.broadcast %146 : vector<16x1xf32> to vector<16x16xf32>
    %148 = arith.mulf %143, %147 : vector<16x16xf32>
    %cst_51 = arith.constant dense<0.000000e+00> : vector<16x8xf32>
    %149 = tpu.matmul %148, %137, %cst_51 {dimension_numbers = #tpu.dot_dimension_numbers<[1], [0], [0], [1], [0, 0, 1, 1], [], []>} : vector<16x16xf32>, vector<16x8xf32>, vector<16x8xf32> -> vector<16x8xf32>
    %150 = vector.extract_strided_slice %102 {offsets = [0, 24], sizes = [16, 8], strides = [1, 1]} : vector<16x32xf32> to vector<16x8xf32>
    %151 = vector.extract_strided_slice %103 {offsets = [0, 24], sizes = [16, 8], strides = [1, 1]} : vector<16x32xf32> to vector<16x8xf32>
    %152 = vector.extract_strided_slice %104 {offsets = [0, 24], sizes = [16, 8], strides = [1, 1]} : vector<16x32xf32> to vector<16x8xf32>
    %cst_52 = arith.constant dense<0.000000e+00> : vector<16x16xf32>
    %153 = tpu.matmul %150, %151, %cst_52 {dimension_numbers = #tpu.dot_dimension_numbers<[1], [1], [0], [0], [0, 0, 1, 0], [], []>} : vector<16x8xf32>, vector<16x8xf32>, vector<16x16xf32> -> vector<16x16xf32>
    %cst_53 = arith.constant dense<0xFF800000> : vector<16xf32>
    %154 = vector.multi_reduction <maximumf>, %153, %cst_53 [1] : vector<16x16xf32> to vector<16xf32>
    %155 = vector.shape_cast %154 : vector<16xf32> to vector<16x1xf32>
    %156 = vector.broadcast %155 : vector<16x1xf32> to vector<16x16xf32>
    %157 = arith.subf %153, %156 : vector<16x16xf32>
    %158 = math.exp %157 : vector<16x16xf32>
    %cst_54 = arith.constant dense<0.000000e+00> : vector<16xf32>
    %159 = vector.multi_reduction <add>, %158, %cst_54 [1] : vector<16x16xf32> to vector<16xf32>
    %160 = vector.shape_cast %159 : vector<16xf32> to vector<16x1xf32>
    %161 = tpu.reciprocal %160 {approx = true} : vector<16x1xf32> -> vector<16x1xf32>
    %162 = vector.broadcast %161 : vector<16x1xf32> to vector<16x16xf32>
    %163 = arith.mulf %158, %162 : vector<16x16xf32>
    %cst_55 = arith.constant dense<0.000000e+00> : vector<16x8xf32>
    %164 = tpu.matmul %163, %152, %cst_55 {dimension_numbers = #tpu.dot_dimension_numbers<[1], [0], [0], [1], [0, 0, 1, 1], [], []>} : vector<16x16xf32>, vector<16x8xf32>, vector<16x8xf32> -> vector<16x8xf32>
    %165 = tpu.concatenate %119, %134, %149, %164 in 1 : vector<16x8xf32>, vector<16x8xf32>, vector<16x8xf32>, vector<16x8xf32> -> vector<16x32xf32>
    %166 = tpu.concatenate %101, %165 in 0 : vector<16x32xf32>, vector<16x32xf32> -> vector<32x32xf32>
    %c0_56 = arith.constant 0 : index
    %c0_57 = arith.constant 0 : index
    %167 = vector.load %arg4[%c0_56, %c0_57] : memref<32x32xf32, #tpu.memory_space<vmem>>, vector<32x32xf32>
    %cst_58 = arith.constant dense<0.000000e+00> : vector<32x32xf32>
    %168 = tpu.matmul %166, %167, %cst_58 {dimension_numbers = #tpu.dot_dimension_numbers<[1], [0], [0], [1], [0, 0, 1, 1], [], []>} : vector<32x32xf32>, vector<32x32xf32>, vector<32x32xf32> -> vector<32x32xf32>
    %c0_59 = arith.constant 0 : index
    %c0_60 = arith.constant 0 : index
    %169 = vector.load %arg5[%c0_59, %c0_60] : memref<1x32xf32, #tpu.memory_space<vmem>>, vector<1x32xf32>
    %170 = vector.broadcast %169 : vector<1x32xf32> to vector<32x32xf32>
    %171 = arith.addf %168, %170 : vector<32x32xf32>
    %172 = arith.mulf %6, %171 : vector<32x32xf32>
    %173 = arith.addf %0, %172 : vector<32x32xf32>
    %cst_61 = arith.constant dense<0.000000e+00> : vector<32xf32>
    %174 = vector.multi_reduction <add>, %173, %cst_61 [1] : vector<32x32xf32> to vector<32xf32>
    %175 = vector.shape_cast %174 : vector<32xf32> to vector<32x1xf32>
    %cst_62 = arith.constant 3.200000e+01 : f32
    %176 = vector.broadcast %cst_62 : f32 to vector<32x1xf32>
    %177 = arith.divf %175, %176 : vector<32x1xf32>
    %178 = vector.broadcast %177 : vector<32x1xf32> to vector<32x32xf32>
    %179 = arith.subf %173, %178 : vector<32x32xf32>
    %180 = arith.mulf %179, %179 : vector<32x32xf32>
    %cst_63 = arith.constant dense<0.000000e+00> : vector<32xf32>
    %181 = vector.multi_reduction <add>, %180, %cst_63 [1] : vector<32x32xf32> to vector<32xf32>
    %182 = vector.shape_cast %181 : vector<32xf32> to vector<32x1xf32>
    %cst_64 = arith.constant 3.200000e+01 : f32
    %183 = vector.broadcast %cst_64 : f32 to vector<32x1xf32>
    %184 = arith.divf %182, %183 : vector<32x1xf32>
    %cst_65 = arith.constant 9.99999997E-7 : f32
    %185 = vector.broadcast %cst_65 : f32 to vector<32x1xf32>
    %186 = arith.addf %184, %185 : vector<32x1xf32>
    %187 = math.rsqrt %186 : vector<32x1xf32>
    %188 = vector.broadcast %187 : vector<32x1xf32> to vector<32x32xf32>
    %189 = arith.mulf %179, %188 : vector<32x32xf32>
    %cst_66 = arith.constant 1.000000e+00 : f32
    %190 = vector.broadcast %cst_66 : f32 to vector<32x32xf32>
    %191 = arith.addf %190, %10 : vector<32x32xf32>
    %192 = arith.mulf %189, %191 : vector<32x32xf32>
    %193 = arith.addf %192, %8 : vector<32x32xf32>
    %c0_67 = arith.constant 0 : index
    %c0_68 = arith.constant 0 : index
    %194 = vector.load %arg6[%c0_67, %c0_68] : memref<32x128xf32, #tpu.memory_space<vmem>>, vector<32x128xf32>
    %cst_69 = arith.constant dense<0.000000e+00> : vector<32x128xf32>
    %195 = tpu.matmul %193, %194, %cst_69 {dimension_numbers = #tpu.dot_dimension_numbers<[1], [0], [0], [1], [0, 0, 1, 1], [], []>} : vector<32x32xf32>, vector<32x128xf32>, vector<32x128xf32> -> vector<32x128xf32>
    %c0_70 = arith.constant 0 : index
    %c0_71 = arith.constant 0 : index
    %196 = vector.load %arg7[%c0_70, %c0_71] : memref<1x128xf32, #tpu.memory_space<vmem>>, vector<1x128xf32>
    %197 = vector.broadcast %196 : vector<1x128xf32> to vector<32x128xf32>
    %198 = arith.addf %195, %197 : vector<32x128xf32>
    %cst_72 = arith.constant 5.000000e-01 : f32
    %199 = vector.broadcast %cst_72 : f32 to vector<32x128xf32>
    %200 = arith.mulf %199, %198 : vector<32x128xf32>
    %cst_73 = arith.constant 4.471500e-02 : f32
    %201 = vector.broadcast %cst_73 : f32 to vector<32x128xf32>
    %202 = arith.mulf %201, %198 : vector<32x128xf32>
    %203 = arith.mulf %202, %198 : vector<32x128xf32>
    %204 = arith.mulf %203, %198 : vector<32x128xf32>
    %205 = arith.addf %198, %204 : vector<32x128xf32>
    %cst_74 = arith.constant 0.797884583 : f32
    %206 = vector.broadcast %cst_74 : f32 to vector<32x128xf32>
    %207 = arith.mulf %206, %205 : vector<32x128xf32>
    %208 = math.tanh %207 : vector<32x128xf32>
    %cst_75 = arith.constant 1.000000e+00 : f32
    %209 = vector.broadcast %cst_75 : f32 to vector<32x128xf32>
    %210 = arith.addf %209, %208 : vector<32x128xf32>
    %211 = arith.mulf %200, %210 : vector<32x128xf32>
    %c0_76 = arith.constant 0 : index
    %c0_77 = arith.constant 0 : index
    %212 = vector.load %arg8[%c0_76, %c0_77] : memref<128x32xf32, #tpu.memory_space<vmem>>, vector<128x32xf32>
    %cst_78 = arith.constant dense<0.000000e+00> : vector<32x32xf32>
    %213 = tpu.matmul %211, %212, %cst_78 {dimension_numbers = #tpu.dot_dimension_numbers<[1], [0], [0], [1], [0, 0, 1, 1], [], []>} : vector<32x128xf32>, vector<128x32xf32>, vector<32x32xf32> -> vector<32x32xf32>
    %c0_79 = arith.constant 0 : index
    %c0_80 = arith.constant 0 : index
    %214 = vector.load %arg9[%c0_79, %c0_80] : memref<1x32xf32, #tpu.memory_space<vmem>>, vector<1x32xf32>
    %215 = vector.broadcast %214 : vector<1x32xf32> to vector<32x32xf32>
    %216 = arith.addf %213, %215 : vector<32x32xf32>
    %217 = arith.mulf %12, %216 : vector<32x32xf32>
    %218 = arith.addf %173, %217 : vector<32x32xf32>
    %c0_81 = arith.constant 0 : index
    %c0_82 = arith.constant 0 : index
    %219 = vector.load %arg10[%c0_81, %c0_82] : memref<32x32xf32, #tpu.memory_space<vmem>>, vector<32x32xf32>
    tpu.vector_store %arg10[%c0_81, %c0_82], %218 {strides = array<i32>} : memref<32x32xf32, #tpu.memory_space<vmem>>, vector<32x32xf32>,
    return
  }
}

</mosaic_0001>

<bundles_post_ra>
// kernel: dit_block.1
= control target key start
LH: loop header
LB: loop body
LE: loop exit
PB: predicated region body
PF: predicated region fallthrough
CT: control target
= control target key end

     0   :  { %vm69_vm0 = vcmask 261120   ;;  %s3682_s0 = inlined_call_operand.vmem [shape: f32[32,32], index: 0, kind: input, shape index: {}]   ;;  %s3683_s1 = inlined_call_operand.vmem [shape: f32[6,32,32], index: 1, kind: input, shape index: {}]   ;;  %s3684_s2 = inlined_call_operand.vmem [shape: f32[32,96], index: 2, kind: input, shape index: {}]   ;;  %s3685_s3 = inlined_call_operand.vmem [shape: f32[1,96], index: 3, kind: input, shape index: {}]   ;;  %s3686_s4 = inlined_call_operand.vmem [shape: f32[32,32], index: 4, kind: input, shape index: {}]   ;;  %s3687_s5 = inlined_call_operand.vmem [shape: f32[1,32], index: 5, kind: input, shape index: {}]   ;;  %s3688_s6 = inlined_call_operand.vmem [shape: f32[32,128], index: 6, kind: input, shape index: {}]   ;;  %s3689_s7 = inlined_call_operand.vmem [shape: f32[1,128], index: 7, kind: input, shape index: {}]   ;;  %s3690_s8 = inlined_call_operand.vmem [shape: f32[128,32], index: 8, kind: input, shape index: {}]   ;;  %s3691_s9 = inlined_call_operand.vmem [shape: f32[1,32], index: 9, kind: input, shape index: {}]   ;;  %s3692_s10 = inlined_call_operand.hbm [shape: f32[32,32], index: 10, kind: output, shape index: {}]  }
   0x1   :  { %v36_v0 = vld [vmem:[%s3682_s0] sm:$0xff]  ;;  %v37_v1 = vld [vmem:[%s3682_s0 + $0x8] sm:$0xff] }
   0x2   :  { %15 = vsyncpa [#allocation3], 0  ;;  %v70_v2 = vsel %vm69_vm0, %v36_v0, 0.0  ;;  %v73_v3 = vsel %vm69_vm0, %v37_v1, 0.0  ;;  %v38_v4 = vld [vmem:[%s3682_s0 + $0x10] sm:$0xff]  ;;  %v39_v15 = vld [vmem:[%s3682_s0 + $0x18] sm:$0xff] }
   0x3   :  { %71 = vadd.xlane.f32.xlu0 %v70_v2  ;;  %v76_v5 = vsel %vm69_vm0, %v38_v4, 0.0  ;;  %v79_v17 = vsel %vm69_vm0, %v39_v15, 0.0  ;;  %v135_v18 = vld [vmem:[%s3684_s2] sm:$0xff]  ;;  %v136_v19 = vld [vmem:[%s3684_s2 + $0x8] sm:$0xff]  ;;  %v137_v20 = vld [vmem:[%s3684_s2 + $0x10] sm:$0xff]  ;;  %vm249_vm1 = vcmask 64512  }
   0x4   :  { %v2746_v21 = vpack.c.bf16 %v136_v19, %v135_v18  ;;  %v138_v22 = vld [vmem:[%s3684_s2 + $0x18] sm:$0xff]  ;;  %v2362_v37 = vld [vmem:[%s3683_s1 + $0x20] sm:$0xff]  ;;  %v2363_v42 = vld [vmem:[%s3683_s1 + $0x28] sm:$0xff]  ;;  %s3094_s26 = smov 96   ;;  %s3096_s27 = smov 120   ;;  %vm333_vm3 = vcmask 130048  }
   0x5   :  { %v2750_v23 = vpack.c.bf16 %v138_v22, %v137_v20  ;;  %v123_v40 = vadd.f32 1.0, %v2362_v37  ;;  %v40_v45 = vld [vmem:[%s3683_s1] sm:$0xff]  ;;  %v124_v47 = vadd.f32 1.0, %v2363_v42  ;;  %v41_v51 = vld [vmem:[%s3683_s1 + $0x8] sm:$0xff]  ;;  %v2364_v57 = vld [vmem:[%s3683_s1 + $0x30] sm:$0xff]  ;;  %s3097_s28 = smov 80  }
   0x6   :  { %2747 = vmatprep.subr.bf16.mxu1 %v2746_v21  ;;  %v125_v58 = vadd.f32 1.0, %v2364_v57  ;;  %v42_v61 = vld [vmem:[%s3683_s1 + $0x10] sm:$0xff]  ;;  %s3098_s2 = smov 112   ;;  %vm3254_vm2 = vmpackc.low %vm249_vm1, %vm249_vm1  ;;  %s3099_s29 = smov 64   ;;  %vm1071_vm4 = vcmask 195584  }
   0x7   :  { %74 = vadd.xlane.f32.xlu0 %v73_v3  ;;  %2749 = vmatpush3.bf16.msra.mxu1 %v2746_v21  ;;  %v2365_v3 = vld [vmem:[%s3683_s1 + $0x38] sm:$0xff]  ;;  %s3100_s30 = smov 48   ;;  %s3101_s11 = smov 56  }
   0x8   :  { %2751 = vmatprep.subr.bf16.mxu1 %v2750_v23  ;;  %s3102_s12 = smov 72   ;;  %s3103_s13 = smov 104  }
   0x9   :  { %s3104_s14 = smov 40   ;;  %s3105_s15 = smov 8  }
   0xa   :  { %s3106_s16 = smov 16   ;;  %s3107_s17 = smov 24  }
   0xb   :  { %77 = vadd.xlane.f32.xlu0 %v76_v5  ;;  %2753 = vmatpush3.bf16.msra.mxu1 %v2750_v23 }
  0x90   :  { %v72_v6 = vpop.xlane.xlu0 %71 }
  0x91   :  { %v83_v7 = vmul.f32 0.03125, %v72_v6 }
  0x93   :  { %v87_v8 = vsub.f32 %v36_v0, %v83_v7  ;;  %v43_v7 = vld [vmem:[%s3683_s1 + $0x18] sm:$0xff] }
  0x94   :  { %v75_v9 = vpop.xlane.xlu0 %74 }
  0x95   :  { %v84_v10 = vmul.f32 0.03125, %v75_v9  ;;  %v91_v11 = vmul.f32 %v87_v8, %v87_v8 }
  0x97   :  { %v88_v12 = vsub.f32 %v37_v1, %v84_v10  ;;  %v95_v13 = vsel %vm69_vm0, %v91_v11, 0.0  ;;  %v3228_v10 = vld [vmem:[%s3685_s3] ss:$0 sm:$0xff]  ;;  %s3095_s3 = smov 88  }
  0x98   :  { %96 = vadd.xlane.f32.xlu1 %v95_v13  ;;  %v78_v24 = vpop.xlane.xlu0 %77 }
  0x99   :  { %v92_v14 = vmul.f32 %v88_v12, %v88_v12  ;;  %v85_v25 = vmul.f32 0.03125, %v78_v24 }
  0x9b   :  { %v98_v16 = vsel %vm69_vm0, %v92_v14, 0.0  ;;  %v89_v26 = vsub.f32 %v38_v4, %v85_v25  ;;  %v126_v4 = vadd.f32 1.0, %v2365_v3 }
  0x9c   :  { %99 = vadd.xlane.f32.xlu1 %v98_v16 }
  0x9d   :  { %v93_v27 = vmul.f32 %v89_v26, %v89_v26 }
  0x9f   :  { %v101_v28 = vsel %vm69_vm0, %v93_v27, 0.0 }
  0xa0   :  { %80 = vadd.xlane.f32.xlu1 %v79_v17  ;;  %102 = vadd.xlane.f32.xlu0 %v101_v28 }
 0x125   :  { %v97_v29 = vpop.xlane.xlu1 %96 }
 0x126   :  { %v107_v30 = vmul.f32 0.03125, %v97_v29 }
 0x128   :  { %v111_v31 = vadd.f32 1e-06, %v107_v30 }
 0x129   :  { %v100_v32 = vpop.xlane.xlu1 %99 }
 0x12a   :  { %2978 = vrsqrt.f32 %v111_v31  ;;  %v108_v33 = vmul.f32 0.03125, %v100_v32 }
 0x12c   :  { %v112_v34 = vadd.f32 1e-06, %v108_v33 }
 0x12d   :  { %v81_v35 = vpop.xlane.xlu1 %80  ;;  %v103_v54 = vpop.xlane.xlu0 %102 }
 0x12e   :  { %2980 = vrsqrt.f32 %v112_v34  ;;  %v86_v36 = vmul.f32 0.03125, %v81_v35  ;;  %v109_v55 = vmul.f32 0.03125, %v103_v54 }
 0x130   :  { %v90_v38 = vsub.f32 %v39_v15, %v86_v36  ;;  %v113_v56 = vadd.f32 1e-06, %v109_v55 }
 0x132   :  { %v94_v39 = vmul.f32 %v90_v38, %v90_v38  ;;  %2982 = vrsqrt.f32 %v113_v56 }
 0x134   :  { %v2979_v41 = vpop.eup %2978  ;;  %v104_v43 = vsel %vm69_vm0, %v94_v39, 0.0 }
 0x135   :  { %v119_v44 = vmul.f32 %v2979_v41, %v87_v8  ;;  %105 = vadd.xlane.f32.xlu1 %v104_v43 }
 0x137   :  { %v127_v46 = vmul.f32 %v123_v40, %v119_v44 }
 0x138   :  { %v2981_v48 = vpop.eup %2980 }
 0x139   :  { %v131_v49 = vadd.f32 %v127_v46, %v40_v45  ;;  %v120_v50 = vmul.f32 %v2981_v48, %v88_v12 }
 0x13b   :  { %2562 = vmatprep.mubr.msk.f32.mxu1 %vm69_vm0, %v131_v49  ;;  %v128_v52 = vmul.f32 %v124_v47, %v120_v50 }
 0x13c   :  { %v2983_v59 = vpop.eup %2982 }
 0x13d   :  { %v132_v53 = vadd.f32 %v128_v52, %v41_v51  ;;  %v121_v60 = vmul.f32 %v2983_v59, %v89_v26 }
 0x13f   :  { %2563 = vmatmul.mubr.msk.f32.vlgmr.msra.gmra.mrb[0].mxu1 %vm69_vm0, %v132_v53  ;;  %v129_v62 = vmul.f32 %v125_v58, %v121_v60 }
 0x141   :  { %v133_v63 = vadd.f32 %v129_v62, %v42_v61 }
 0x143   :  { %2565 = vmatprep.mubr.msk.f32.mxu1 %vm69_vm0, %v133_v63 }
 0x1c2   :  { %v106_v0 = vpop.xlane.xlu1 %105 }
 0x1c3   :  { %v110_v1 = vmul.f32 0.03125, %v106_v0 }
 0x1c5   :  { %v114_v2 = vadd.f32 1e-06, %v110_v1 }
 0x1c7   :  { %2984 = vrsqrt.f32 %v114_v2 }
 0x1d1   :  { %v2985_v5 = vpop.eup %2984 }
 0x1d2   :  { %v122_v6 = vmul.f32 %v2985_v5, %v90_v38 }
 0x1d4   :  { %v130_v8 = vmul.f32 %v126_v4, %v122_v6 }
 0x1d6   :  { %v134_v9 = vadd.f32 %v130_v8, %v43_v7 }
 0x1d8   :  { %2566 = vmatmul.mubr.msk.f32.gmra.mrb[2].mxu1 %vm69_vm0, %v134_v9 }
 0x212   :  { %v2564_v11 = vpop.f32.mrb[0].mxu1 }
 0x213   :  { %v3231_v12 = vadd.f32 %v2564_v11, %v3228_v10  ;;  %v224_v13 = vpop.f32.mrb[1].mxu1 }
 0x214   :  { %v3234_v14 = vadd.f32 %v3228_v10, %v224_v13 }
 0x216   :  { %2572 = vmatprep.mubr.msk.f32.mxu1 %vm249_vm1, %v3234_v14  ;;  %v3240_v15 = vpack.i.bf16 %v3231_v12, %v3234_v14 }
 0x218   :  { %2899 = vrot.lane.b32.xlu0 %v3240_v15, %s3094_s26 }
 0x21c   :  { %2909 = vrot.lane.b32.xlu0 %v3240_v15, %s3095_s3 }
 0x220   :  { %443 = vrot.lane.b32.xlu0 %v3234_v14, %s3096_s27 }
 0x224   :  { %2914 = vrot.lane.b32.xlu0 %v3240_v15, %s3097_s28 }
 0x228   :  { %643 = vrot.lane.b32.xlu0 %v3234_v14, %s3098_s2 }
 0x28a   :  { %v2900_v16 = vpop.permute.xlu0 %2899 }
 0x28b   :  { %v2902_v17 = vunpack.i.h.bf16 %v2900_v16  ;;  %v2901_v18 = vunpack.i.l.bf16 %v2900_v16 }
 0x28d   :  { %v2754_v20 = vpack.c.bf16 %v2902_v17, %v2901_v18 }
 0x28e   :  { %v2910_v21 = vpop.permute.xlu0 %2909 }
 0x28f   :  { %2756 = vmatprep.subr.msk.bf16.mxu1 %vm3254_vm2, %v2754_v20  ;;  %v2912_v40 = vunpack.i.h.bf16 %v2910_v21  ;;  %v2911_v42 = vunpack.i.l.bf16 %v2910_v21 }
 0x290   :  { %2759 = vmatpush3.bf16.xpose.msk.msra.mxu1 %vm3254_vm2, %v2754_v20 }
 0x291   :  { %v2764_v46 = vpack.c.bf16 %v2912_v40, %v2911_v42 }
 0x292   :  { %v444_v22 = vpop.permute.xlu0 %443 }
 0x296   :  { %v2915_v23 = vpop.permute.xlu0 %2914 }
 0x297   :  { %v2917_v24 = vunpack.i.h.bf16 %v2915_v23  ;;  %v2916_v25 = vunpack.i.l.bf16 %v2915_v23  ;;  %2573 = vmatmul.mubr.msk.f32.vlgmr.msra.gmra.mrb[4].mxu1 %vm249_vm1, %v3231_v12 }
 0x299   :  { %v2774_v26 = vpack.c.bf16 %v2917_v24, %v2916_v25 }
 0x29a   :  { %v644_v27 = vpop.permute.xlu0 %643 }
 0x29b   :  { %2776 = vmatprep.subr.msk.bf16.mxu0 %vm3254_vm2, %v2774_v26  ;;  %2600 = vmatprep.mubr.msk.f32.mxu0 %vm249_vm1, %v644_v27 }
 0x29c   :  { %2779 = vmatpush3.bf16.xpose.msk.msra.mxu0 %vm3254_vm2, %v2774_v26 }
 0x2ab   :  { %v3269_v28 = vpop.f32.mrb[2].mxu1 }
 0x2ac   :  { %v3271_v29 = vpop.f32.mrb[3].mxu1 }
 0x36a   :  { %v2574_v30 = vpop.f32.mrb[4].mxu1 }
 0x36b   :  { %v324_v31 = vpop.f32.mrb[5].mxu1  ;;  %v337_v33 = vsel %vm333_vm3, %v2574_v30, -inf }
 0x36c   :  { %v334_v32 = vsel %vm333_vm3, %v324_v31, -inf }
 0x36d   :  { %335 = vmax.xlane.f32.xlu1 %v334_v32 }
 0x371   :  { %338 = vmax.xlane.f32.xlu1 %v337_v33 }
 0x382   :  { %2904 = vrot.lane.b32.xlu1 %v3240_v15, %s3099_s29 }
 0x3fa   :  { %v336_v34 = vpop.xlane.xlu1 %335 }
 0x3fb   :  { %v340_v35 = vsub.f32 %v324_v31, %v336_v34 }
 0x3fd   :  { %v342_v38 = vmul.f32 1.442695, %v340_v35 }
 0x3fe   :  { %v339_v36 = vpop.xlane.xlu1 %338 }
 0x3ff   :  { %v341_v37 = vsub.f32 %v2574_v30, %v339_v36 }
 0x401   :  { %v344_v39 = vmul.f32 1.442695, %v341_v37 }
 0x402   :  { %v2905_v41 = vpop.permute.xlu1 %2904 }
 0x403   :  { %2986 = vpow2.f32 %v344_v39  ;;  %v2907_v43 = vunpack.i.h.bf16 %v2905_v41  ;;  %v2906_v44 = vunpack.i.l.bf16 %v2905_v41 }
 0x404   :  { %2988 = vpow2.f32 %v342_v38 }
 0x405   :  { %v2760_v45 = vpack.c.bf16 %v2907_v43, %v2906_v44 }
 0x407   :  { %2761 = vmatprep.subr.bf16.mxu1 %v2760_v45 }
 0x408   :  { %2763 = vmatpush3.bf16.msra.mxu1 %v2760_v45 }
 0x409   :  { %2766 = vmatprep.subr.msk.bf16.mxu1 %vm3254_vm2, %v2764_v46 }
 0x40d   :  { %v2987_v47 = vpop.eup %2986 }
 0x40e   :  { %v349_v48 = vsel %vm333_vm3, %v2987_v47, 0.0  ;;  %v2989_v49 = vpop.eup %2988 }
 0x40f   :  { %350 = vadd.xlane.f32.xlu1 %v349_v48  ;;  %v346_v50 = vsel %vm333_vm3, %v2989_v49, 0.0 }
 0x413   :  { %347 = vadd.xlane.f32.xlu1 %v346_v50 }
 0x424   :  { %445 = vrot.lane.b32.xlu1 %v3231_v12, %s3096_s27 }
 0x428   :  { %645 = vrot.lane.b32.xlu1 %v3231_v12, %s3098_s2 }
 0x49c   :  { %v351_v51 = vpop.xlane.xlu1 %350 }
 0x49d   :  { %2990 = vrcp.f32 %v351_v51 }
 0x4a0   :  { %v348_v52 = vpop.xlane.xlu1 %347 }
 0x4a1   :  { %2992 = vrcp.f32 %v348_v52 }
 0x4a4   :  { %v446_v53 = vpop.permute.xlu1 %445 }
 0x4a7   :  { %v2991_v55 = vpop.eup %2990 }
 0x4a8   :  { %v646_v54 = vpop.permute.xlu1 %645  ;;  %v355_v58 = vmul.f32 %v2991_v55, %v2987_v47 }
 0x4a9   :  { %2601 = vmatmul.mubr.msk.f32.vlgmr.msra.gmra.mrb[0].mxu0 %vm249_vm1, %v646_v54 }
 0x4ab   :  { %v2993_v56 = vpop.eup %2992 }
 0x4ac   :  { %v354_v57 = vmul.f32 %v2993_v56, %v2989_v49 }
 0x4ae   :  { %2579 = vmatprep.mubr.msk.f32.mxu1 %vm333_vm3, %v354_v57 }
 0x4af   :  { %2580 = vmatmul.mubr.msk.f32.vlgmr.msra.gmra.mrb[6].mxu1 %vm333_vm3, %v355_v58 }
 0x4b0   :  { %2769 = vmatpush3.bf16.xpose.msk.msra.mxu1 %vm3254_vm2, %v2764_v46  ;;  %2586 = vmatprep.mubr.msk.f32.mxu1 %vm249_vm1, %v444_v22 }
 0x4b7   :  { %2587 = vmatmul.mubr.msk.f32.vlgmr.msra.gmra.mrb[8].mxu1 %vm249_vm1, %v446_v53 }
 0x57c   :  { %v2602_v59 = vpop.f32.mrb[0].mxu0 }
 0x57d   :  { %v725_v60 = vpop.f32.mrb[1].mxu0  ;;  %v737_v4 = vsel %vm333_vm3, %v2602_v59, -inf }
 0x57e   :  { %v734_v3 = vsel %vm333_vm3, %v725_v60, -inf }
 0x582   :  { %v3292_v61 = vpop.f32.mrb[6].mxu1 }
 0x583   :  { %v3294_v62 = vpop.f32.mrb[7].mxu1 }
 0x58a   :  { %v2588_v63 = vpop.f32.mrb[8].mxu1 }
 0x58b   :  { %v525_v0 = vpop.f32.mrb[9].mxu1  ;;  %v537_v1 = vsel %vm333_vm3, %v2588_v63, -inf }
 0x58c   :  { %538 = vmax.xlane.f32.xlu1 %v537_v1  ;;  %v534_v2 = vsel %vm333_vm3, %v525_v0, -inf }
 0x58d   :  { %535 = vmax.xlane.f32.xlu0 %v534_v2 }
 0x591   :  { %735 = vmax.xlane.f32.xlu0 %v734_v3 }
 0x595   :  { %738 = vmax.xlane.f32.xlu0 %v737_v4 }
 0x619   :  { %v539_v7 = vpop.xlane.xlu1 %538 }
 0x61a   :  { %v536_v5 = vpop.xlane.xlu0 %535  ;;  %v541_v11 = vsub.f32 %v2588_v63, %v539_v7 }
 0x61b   :  { %v540_v6 = vsub.f32 %v525_v0, %v536_v5 }
 0x61c   :  { %v544_v20 = vmul.f32 1.442695, %v541_v11 }
 0x61d   :  { %v542_v13 = vmul.f32 1.442695, %v540_v6 }
 0x61e   :  { %v736_v8 = vpop.xlane.xlu0 %735 }
 0x61f   :  { %v740_v9 = vsub.f32 %v725_v60, %v736_v8 }
 0x621   :  { %v742_v16 = vmul.f32 1.442695, %v740_v9 }
 0x622   :  { %v739_v17 = vpop.xlane.xlu0 %738 }
 0x623   :  { %2994 = vpow2.f32 %v742_v16  ;;  %v741_v18 = vsub.f32 %v2602_v59, %v739_v17 }
 0x624   :  { %2996 = vpow2.f32 %v542_v13 }
 0x625   :  { %v744_v21 = vmul.f32 1.442695, %v741_v18 }
 0x627   :  { %2998 = vpow2.f32 %v744_v21  ;;  %v3344_v21 = vadd.f32 %v3228_v10, %v3271_v29 }
 0x628   :  { %3000 = vpow2.f32 %v544_v20  ;;  %v3340_v20 = vadd.f32 %v3269_v28, %v3228_v10 }
 0x62d   :  { %v2995_v22 = vpop.eup %2994 }
 0x62e   :  { %v746_v23 = vsel %vm333_vm3, %v2995_v22, 0.0  ;;  %v2997_v24 = vpop.eup %2996 }
 0x62f   :  { %747 = vadd.xlane.f32.xlu0 %v746_v23  ;;  %v546_v26 = vsel %vm333_vm3, %v2997_v24, 0.0 }
 0x631   :  { %v2999_v25 = vpop.eup %2998 }
 0x632   :  { %v749_v27 = vsel %vm333_vm3, %v2999_v25, 0.0  ;;  %v3001_v30 = vpop.eup %3000 }
 0x633   :  { %547 = vadd.xlane.f32.xlu0 %v546_v26  ;;  %750 = vadd.xlane.f32.xlu1 %v749_v27  ;;  %v549_v31 = vsel %vm333_vm3, %v3001_v30, 0.0 }
 0x637   :  { %550 = vadd.xlane.f32.xlu1 %v549_v31 }
 0x648   :  { %2924 = vrot.lane.b32.xlu1 %v3240_v15, %s3100_s30 }
 0x649   :  { %2919 = vrot.lane.b32.xlu0 %v3240_v15, %s3101_s11 }
 0x64c   :  { %2929 = vrot.lane.b32.xlu1 %v3240_v15, %s3102_s12 }
 0x64d   :  { %845 = vrot.lane.b32.xlu0 %v3231_v12, %s3103_s13 }
 0x650   :  { %843 = vrot.lane.b32.xlu1 %v3234_v14, %s3103_s13 }
 0x6bc   :  { %v748_v32 = vpop.xlane.xlu0 %747 }
 0x6c0   :  { %v751_v33 = vpop.xlane.xlu1 %750  ;;  %v548_v34 = vpop.xlane.xlu0 %547 }
 0x6c1   :  { %3002 = vrcp.f32 %v548_v34 }
 0x6c2   :  { %3004 = vrcp.f32 %v748_v32 }
 0x6c4   :  { %v551_v35 = vpop.xlane.xlu1 %550  ;;  %v2920_v36 = vpop.permute.xlu0 %2919 }
 0x6c5   :  { %3006 = vrcp.f32 %v551_v35  ;;  %v2922_v37 = vunpack.i.h.bf16 %v2920_v36  ;;  %v2921_v38 = vunpack.i.l.bf16 %v2920_v36 }
 0x6c6   :  { %3008 = vrcp.f32 %v751_v33 }
 0x6c7   :  { %v2770_v39 = vpack.c.bf16 %v2922_v37, %v2921_v38 }
 0x6c8   :  { %v2925_v40 = vpop.permute.xlu1 %2924  ;;  %v846_v55 = vpop.permute.xlu0 %845 }
 0x6c9   :  { %v2927_v41 = vunpack.i.h.bf16 %v2925_v40  ;;  %v2926_v42 = vunpack.i.l.bf16 %v2925_v40  ;;  %2771 = vmatprep.subr.bf16.mxu1 %v2770_v39 }
 0x6ca   :  { %2773 = vmatpush3.bf16.msra.mxu1 %v2770_v39 }
 0x6cb   :  { %v2780_v12 = vpack.c.bf16 %v2927_v41, %v2926_v42  ;;  %v3003_v43 = vpop.eup %3002 }
 0x6cc   :  { %v2930_v14 = vpop.permute.xlu1 %2929  ;;  %v554_v44 = vmul.f32 %v3003_v43, %v2997_v24  ;;  %v3005_v45 = vpop.eup %3004 }
 0x6cd   :  { %2781 = vmatprep.subr.bf16.mxu1 %v2780_v12  ;;  %v2932_v46 = vunpack.i.h.bf16 %v2930_v14  ;;  %v2931_v47 = vunpack.i.l.bf16 %v2930_v14  ;;  %v754_v51 = vmul.f32 %v3005_v45, %v2995_v22  ;;  %v3348_v22 = vpack.i.bf16 %v3340_v20, %v3344_v21 }
 0x6ce   :  { %2593 = vmatprep.mubr.msk.f32.mxu1 %vm333_vm3, %v554_v44 }
 0x6cf   :  { %v3007_v48 = vpop.eup %3006  ;;  %v2784_v52 = vpack.c.bf16 %v2932_v46, %v2931_v47 }
 0x6d0   :  { %v555_v49 = vmul.f32 %v3007_v48, %v3001_v30  ;;  %v3009_v50 = vpop.eup %3008  ;;  %v844_v54 = vpop.permute.xlu1 %843 }
 0x6d1   :  { %v755_v53 = vmul.f32 %v3009_v50, %v2999_v25 }
 0x6d2   :  { %2594 = vmatmul.mubr.msk.f32.vlgmr.msra.gmra.mrb[10].mxu1 %vm333_vm3, %v555_v49 }
 0x6d3   :  { %2783 = vmatpush3.bf16.msra.mxu1 %v2780_v12  ;;  %2607 = vmatprep.mubr.msk.f32.mxu1 %vm333_vm3, %v754_v51 }
 0x6d4   :  { %2786 = vmatprep.subr.msk.bf16.mxu1 %vm3254_vm2, %v2784_v52 }
 0x6d6   :  { %2608 = vmatmul.mubr.msk.f32.vlgmr.msra.gmra.mrb[12].mxu1 %vm333_vm3, %v755_v53 }
 0x6d7   :  { %2614 = vmatprep.mubr.msk.f32.mxu1 %vm249_vm1, %v844_v54 }
 0x6dc   :  { %2789 = vmatpush3.bf16.xpose.msk.msra.mxu1 %vm3254_vm2, %v2784_v52 }
 0x6e3   :  { %2615 = vmatmul.mubr.msk.f32.vlgmr.msra.gmra.mrb[14].mxu1 %vm249_vm1, %v846_v55 }
 0x7a5   :  { %v3324_v56 = vpop.f32.mrb[10].mxu1 }
 0x7a6   :  { %v3326_v57 = vpop.f32.mrb[11].mxu1 }
 0x7a9   :  { %v3328_v58 = vpop.f32.mrb[12].mxu1 }
 0x7aa   :  { %v3330_v59 = vpop.f32.mrb[13].mxu1 }
 0x7b6   :  { %v2616_v60 = vpop.f32.mrb[14].mxu1 }
 0x7b7   :  { %v925_v63 = vpop.f32.mrb[15].mxu1  ;;  %v937_v0 = vsel %vm333_vm3, %v2616_v60, -inf }
 0x7b8   :  { %938 = vmax.xlane.f32.xlu0 %v937_v0  ;;  %v934_v1 = vsel %vm333_vm3, %v925_v63, -inf }
 0x7b9   :  { %935 = vmax.xlane.f32.xlu1 %v934_v1 }
 0x7ca   :  { %2934 = vrot.lane.b32.xlu1 %v3240_v15, %s3104_s14 }
 0x845   :  { %v939_v2 = vpop.xlane.xlu0 %938 }
 0x846   :  { %v941_v3 = vsub.f32 %v2616_v60, %v939_v2  ;;  %v936_v4 = vpop.xlane.xlu1 %935 }
 0x847   :  { %v940_v5 = vsub.f32 %v925_v63, %v936_v4 }
 0x848   :  { %v944_v6 = vmul.f32 1.442695, %v941_v3 }
 0x849   :  { %v942_v7 = vmul.f32 1.442695, %v940_v5 }
 0x84a   :  { %3010 = vpow2.f32 %v944_v6  ;;  %v2935_v8 = vpop.permute.xlu1 %2934 }
 0x84b   :  { %v2937_v9 = vunpack.i.h.bf16 %v2935_v8  ;;  %v2936_v11 = vunpack.i.l.bf16 %v2935_v8  ;;  %3012 = vpow2.f32 %v942_v7 }
 0x84d   :  { %v2790_v13 = vpack.c.bf16 %v2937_v9, %v2936_v11 }
 0x84f   :  { %2791 = vmatprep.subr.bf16.mxu0 %v2790_v13 }
 0x850   :  { %2793 = vmatpush3.bf16.msra.mxu0 %v2790_v13 }
 0x854   :  { %v3011_v16 = vpop.eup %3010 }
 0x855   :  { %v949_v17 = vsel %vm333_vm3, %v3011_v16, 0.0  ;;  %v3013_v18 = vpop.eup %3012 }
 0x856   :  { %950 = vadd.xlane.f32.xlu0 %v949_v17  ;;  %v946_v15 = vsel %vm333_vm3, %v3013_v18, 0.0 }
 0x85a   :  { %947 = vadd.xlane.f32.xlu0 %v946_v15 }
 0x870   :  { %2939 = vrot.lane.b32.xlu0 %v3348_v22, %s3094_s26 }
 0x8e3   :  { %v951_v23 = vpop.xlane.xlu0 %950 }
 0x8e4   :  { %3014 = vrcp.f32 %v951_v23 }
 0x8e7   :  { %v948_v24 = vpop.xlane.xlu0 %947 }
 0x8e8   :  { %3016 = vrcp.f32 %v948_v24 }
 0x8eb   :  { %v2940_v25 = vpop.permute.xlu0 %2939 }
 0x8ec   :  { %v2942_v26 = vunpack.i.h.bf16 %v2940_v25  ;;  %v2941_v27 = vunpack.i.l.bf16 %v2940_v25 }
 0x8ee   :  { %v2794_v28 = vpack.c.bf16 %v2942_v26, %v2941_v27  ;;  %v3015_v10 = vpop.eup %3014 }
 0x8ef   :  { %v955_v31 = vmul.f32 %v3015_v10, %v3011_v16 }
 0x8f0   :  { %2796 = vmatprep.subr.msk.bf16.mxu0 %vm3254_vm2, %v2794_v28 }
 0x8f2   :  { %v3017_v29 = vpop.eup %3016 }
 0x8f3   :  { %v954_v30 = vmul.f32 %v3017_v29, %v3013_v18 }
 0x8f5   :  { %2621 = vmatprep.mubr.msk.f32.mxu0 %vm333_vm3, %v954_v30 }
 0x8f6   :  { %2622 = vmatmul.mubr.msk.f32.vlgmr.msra.gmra.mrb[2].mxu0 %vm333_vm3, %v955_v31 }
 0x8f7   :  { %2799 = vmatpush3.bf16.xpose.msk.msra.mxu0 %vm3254_vm2, %v2794_v28  ;;  %2628 = vmatprep.mubr.msk.f32.mxu0 %vm249_vm1, %v3344_v21 }
 0x8fe   :  { %2629 = vmatmul.mubr.msk.f32.vlgmr.msra.gmra.mrb[4].mxu0 %vm249_vm1, %v3340_v20 }
 0x9c9   :  { %v3362_v32 = vpop.f32.mrb[2].mxu0 }
 0x9ca   :  { %v3364_v33 = vpop.f32.mrb[3].mxu0 }
 0x9d1   :  { %v2630_v34 = vpop.f32.mrb[4].mxu0 }
 0x9d2   :  { %v1154_v35 = vpop.f32.mrb[5].mxu0  ;;  %v1166_v36 = vsel %vm333_vm3, %v2630_v34, -inf }
 0x9d3   :  { %1167 = vmax.xlane.f32.xlu0 %v1166_v36  ;;  %v1163_v37 = vsel %vm333_vm3, %v1154_v35, -inf }
 0x9d4   :  { %1164 = vmax.xlane.f32.xlu1 %v1163_v37 }
 0x9e5   :  { %2944 = vrot.lane.b32.xlu1 %v3348_v22, %s3099_s29 }
 0x9e9   :  { %1272 = vrot.lane.b32.xlu1 %v3344_v21, %s3096_s27 }
 0xa60   :  { %v1168_v38 = vpop.xlane.xlu0 %1167 }
 0xa61   :  { %v1170_v39 = vsub.f32 %v2630_v34, %v1168_v38  ;;  %v1165_v40 = vpop.xlane.xlu1 %1164 }
 0xa62   :  { %v1169_v41 = vsub.f32 %v1154_v35, %v1165_v40 }
 0xa63   :  { %v1173_v42 = vmul.f32 1.442695, %v1170_v39 }
 0xa64   :  { %v1171_v12 = vmul.f32 1.442695, %v1169_v41 }
 0xa65   :  { %3018 = vpow2.f32 %v1173_v42  ;;  %v2945_v43 = vpop.permute.xlu1 %2944 }
 0xa66   :  { %3020 = vpow2.f32 %v1171_v12  ;;  %v2947_v14 = vunpack.i.h.bf16 %v2945_v43  ;;  %v2946_v44 = vunpack.i.l.bf16 %v2945_v43 }
 0xa68   :  { %v2800_v45 = vpack.c.bf16 %v2947_v14, %v2946_v44 }
 0xa69   :  { %v1273_v50 = vpop.permute.xlu1 %1272 }
 0xa6a   :  { %2801 = vmatprep.subr.bf16.mxu1 %v2800_v45 }
 0xa6b   :  { %2803 = vmatpush3.bf16.msra.mxu1 %v2800_v45 }
 0xa6f   :  { %v3019_v46 = vpop.eup %3018 }
 0xa70   :  { %v3021_v47 = vpop.eup %3020  ;;  %v1178_v48 = vsel %vm333_vm3, %v3019_v46, 0.0 }
 0xa71   :  { %1179 = vadd.xlane.f32.xlu0 %v1178_v48  ;;  %v1175_v49 = vsel %vm333_vm3, %v3021_v47, 0.0 }
 0xa72   :  { %1176 = vadd.xlane.f32.xlu1 %v1175_v49 }
 0xa83   :  { %1274 = vrot.lane.b32.xlu1 %v3340_v20, %s3096_s27 }
 0xa87   :  { %2949 = vrot.lane.b32.xlu0 %v3348_v22, %s3095_s3 }
 0xafe   :  { %v1180_v51 = vpop.xlane.xlu0 %1179 }
 0xaff   :  { %3022 = vrcp.f32 %v1180_v51  ;;  %v1177_v52 = vpop.xlane.xlu1 %1176 }
 0xb00   :  { %3024 = vrcp.f32 %v1177_v52 }
 0xb02   :  { %v2950_v53 = vpop.permute.xlu0 %2949 }
 0xb03   :  { %v2952_v54 = vunpack.i.h.bf16 %v2950_v53  ;;  %v2951_v55 = vunpack.i.l.bf16 %v2950_v53  ;;  %v1275_v3 = vpop.permute.xlu1 %1274 }
 0xb05   :  { %v2804_v60 = vpack.c.bf16 %v2952_v54, %v2951_v55 }
 0xb07   :  { %2806 = vmatprep.subr.msk.bf16.mxu1 %vm3254_vm2, %v2804_v60 }
 0xb09   :  { %v3023_v63 = vpop.eup %3022 }
 0xb0a   :  { %v3025_v0 = vpop.eup %3024  ;;  %v1184_v2 = vmul.f32 %v3023_v63, %v3019_v46 }
 0xb0b   :  { %v1183_v1 = vmul.f32 %v3025_v0, %v3021_v47 }
 0xb0d   :  { %2635 = vmatprep.mubr.msk.f32.mxu1 %vm333_vm3, %v1183_v1 }
 0xb0e   :  { %2636 = vmatmul.mubr.msk.f32.vlgmr.msra.gmra.mrb[16].mxu1 %vm333_vm3, %v1184_v2 }
 0xb0f   :  { %2809 = vmatpush3.bf16.xpose.msk.msra.mxu1 %vm3254_vm2, %v2804_v60  ;;  %2642 = vmatprep.mubr.msk.f32.mxu1 %vm249_vm1, %v1273_v50 }
 0xb16   :  { %2643 = vmatmul.mubr.msk.f32.vlgmr.msra.gmra.mrb[18].mxu1 %vm249_vm1, %v1275_v3 }
 0xbe1   :  { %v3386_v4 = vpop.f32.mrb[16].mxu1 }
 0xbe2   :  { %v3388_v5 = vpop.f32.mrb[17].mxu1 }
 0xbe9   :  { %v2644_v6 = vpop.f32.mrb[18].mxu1 }
 0xbea   :  { %v1354_v7 = vpop.f32.mrb[19].mxu1  ;;  %v1366_v8 = vsel %vm333_vm3, %v2644_v6, -inf }
 0xbeb   :  { %1367 = vmax.xlane.f32.xlu0 %v1366_v8  ;;  %v1363_v9 = vsel %vm333_vm3, %v1354_v7, -inf }
 0xbec   :  { %1364 = vmax.xlane.f32.xlu1 %v1363_v9 }
 0xbfd   :  { %2954 = vrot.lane.b32.xlu1 %v3348_v22, %s3101_s11  ;;  %s3108_s11 = smov [#allocation2]  }
 0xc01   :  { %1472 = vrot.lane.b32.xlu1 %v3344_v21, %s3098_s2 }
 0xc05   :  { %1474 = vrot.lane.b32.xlu1 %v3340_v20, %s3098_s2 }
 0xc78   :  { %v1368_v11 = vpop.xlane.xlu0 %1367 }
 0xc79   :  { %v1370_v13 = vsub.f32 %v2644_v6, %v1368_v11  ;;  %v1365_v16 = vpop.xlane.xlu1 %1364 }
 0xc7a   :  { %v1369_v17 = vsub.f32 %v1354_v7, %v1365_v16 }
 0xc7b   :  { %v1373_v18 = vmul.f32 1.442695, %v1370_v13 }
 0xc7c   :  { %v1371_v15 = vmul.f32 1.442695, %v1369_v17 }
 0xc7d   :  { %3026 = vpow2.f32 %v1373_v18  ;;  %v2955_v23 = vpop.permute.xlu1 %2954 }
 0xc7e   :  { %v2957_v24 = vunpack.i.h.bf16 %v2955_v23  ;;  %v2956_v25 = vunpack.i.l.bf16 %v2955_v23  ;;  %3028 = vpow2.f32 %v1371_v15 }
 0xc80   :  { %v2810_v26 = vpack.c.bf16 %v2957_v24, %v2956_v25 }
 0xc81   :  { %v1473_v42 = vpop.permute.xlu1 %1472 }
 0xc82   :  { %2811 = vmatprep.subr.bf16.mxu0 %v2810_v26 }
 0xc83   :  { %2813 = vmatpush3.bf16.msra.mxu0 %v2810_v26 }
 0xc85   :  { %v1475_v12 = vpop.permute.xlu1 %1474 }
 0xc87   :  { %v3027_v27 = vpop.eup %3026 }
 0xc88   :  { %v1378_v28 = vsel %vm333_vm3, %v3027_v27, 0.0  ;;  %v3029_v10 = vpop.eup %3028 }
 0xc89   :  { %1379 = vadd.xlane.f32.xlu0 %v1378_v28  ;;  %v1375_v29 = vsel %vm333_vm3, %v3029_v10, 0.0 }
 0xc8d   :  { %1376 = vadd.xlane.f32.xlu0 %v1375_v29 }
 0xca3   :  { %2959 = vrot.lane.b32.xlu0 %v3348_v22, %s3097_s28 }
 0xd16   :  { %v1380_v30 = vpop.xlane.xlu0 %1379 }
 0xd17   :  { %3030 = vrcp.f32 %v1380_v30 }
 0xd1a   :  { %v1377_v31 = vpop.xlane.xlu0 %1376 }
 0xd1b   :  { %3032 = vrcp.f32 %v1377_v31 }
 0xd1e   :  { %v2960_v34 = vpop.permute.xlu0 %2959 }
 0xd1f   :  { %v2962_v35 = vunpack.i.h.bf16 %v2960_v34  ;;  %v2961_v36 = vunpack.i.l.bf16 %v2960_v34 }
 0xd21   :  { %v2814_v37 = vpack.c.bf16 %v2962_v35, %v2961_v36  ;;  %v3031_v38 = vpop.eup %3030 }
 0xd22   :  { %v1384_v41 = vmul.f32 %v3031_v38, %v3027_v27  ;;  %v1902_v38 = vld [vmem:[%s3686_s4] sm:$0xff] }
 0xd23   :  { %2816 = vmatprep.subr.msk.bf16.mxu0 %vm3254_vm2, %v2814_v37 }
 0xd25   :  { %v3033_v39 = vpop.eup %3032 }
 0xd26   :  { %v1383_v40 = vmul.f32 %v3033_v39, %v3029_v10  ;;  %v1903_v39 = vld [vmem:[%s3686_s4 + $0x8] sm:$0xff] }
 0xd28   :  { %2649 = vmatprep.mubr.msk.f32.mxu0 %vm333_vm3, %v1383_v40  ;;  %v2834_v40 = vpack.c.bf16 %v1903_v39, %v1902_v38 }
 0xd29   :  { %2650 = vmatmul.mubr.msk.f32.vlgmr.msra.gmra.mrb[6].mxu0 %vm333_vm3, %v1384_v41 }
 0xd2a   :  { %2819 = vmatpush3.bf16.xpose.msk.msra.mxu0 %vm3254_vm2, %v2814_v37  ;;  %2656 = vmatprep.mubr.msk.f32.mxu0 %vm249_vm1, %v1473_v42 }
 0xd31   :  { %2657 = vmatmul.mubr.msk.f32.vlgmr.msra.gmra.mrb[8].mxu0 %vm249_vm1, %v1475_v12 }
 0xdfc   :  { %v3410_v43 = vpop.f32.mrb[6].mxu0 }
 0xdfd   :  { %v3412_v14 = vpop.f32.mrb[7].mxu0 }
 0xe04   :  { %v2658_v44 = vpop.f32.mrb[8].mxu0 }
 0xe05   :  { %v1554_v45 = vpop.f32.mrb[9].mxu0  ;;  %v1566_v46 = vsel %vm333_vm3, %v2658_v44, -inf }
 0xe06   :  { %1567 = vmax.xlane.f32.xlu0 %v1566_v46  ;;  %v1563_v47 = vsel %vm333_vm3, %v1554_v45, -inf  ;;  %v1904_v46 = vld [vmem:[%s3686_s4 + $0x10] sm:$0xff] }
 0xe07   :  { %1564 = vmax.xlane.f32.xlu1 %v1563_v47 }
 0xe18   :  { %2964 = vrot.lane.b32.xlu1 %v3348_v22, %s3100_s30 }
 0xe1c   :  { %1672 = vrot.lane.b32.xlu1 %v3344_v21, %s3103_s13 }
 0xe20   :  { %1674 = vrot.lane.b32.xlu1 %v3340_v20, %s3103_s13 }
 0xe93   :  { %v1568_v48 = vpop.xlane.xlu0 %1567 }
 0xe94   :  { %v1570_v49 = vsub.f32 %v2658_v44, %v1568_v48  ;;  %v1565_v50 = vpop.xlane.xlu1 %1564 }
 0xe95   :  { %v1569_v51 = vsub.f32 %v1554_v45, %v1565_v50 }
 0xe96   :  { %v1573_v52 = vmul.f32 1.442695, %v1570_v49 }
 0xe97   :  { %v1571_v53 = vmul.f32 1.442695, %v1569_v51 }
 0xe98   :  { %3034 = vpow2.f32 %v1573_v52  ;;  %v2965_v54 = vpop.permute.xlu1 %2964 }
 0xe99   :  { %v2967_v55 = vunpack.i.h.bf16 %v2965_v54  ;;  %v2966_v60 = vunpack.i.l.bf16 %v2965_v54  ;;  %3036 = vpow2.f32 %v1571_v53 }
 0xe9b   :  { %v2820_v63 = vpack.c.bf16 %v2967_v55, %v2966_v60 }
 0xe9c   :  { %v1673_v18 = vpop.permute.xlu1 %1672 }
 0xe9d   :  { %2821 = vmatprep.subr.bf16.mxu1 %v2820_v63 }
 0xe9e   :  { %2823 = vmatpush3.bf16.msra.mxu1 %v2820_v63 }
 0xea0   :  { %v1675_v15 = vpop.permute.xlu1 %1674 }
 0xea2   :  { %v3035_v0 = vpop.eup %3034 }
 0xea3   :  { %v1578_v21 = vsel %vm333_vm3, %v3035_v0, 0.0  ;;  %v3037_v1 = vpop.eup %3036 }
 0xea4   :  { %1579 = vadd.xlane.f32.xlu0 %v1578_v21  ;;  %v1575_v20 = vsel %vm333_vm3, %v3037_v1, 0.0 }
 0xea8   :  { %1576 = vadd.xlane.f32.xlu0 %v1575_v20  ;;  %v2435_v20 = vld [vmem:[%s3687_s5] ss:$0 sm:$0xff]  ;;  %s2351_s5 = sshll.u32 %s3108_s11, 4  ;;  %s2352_s5 = int_to_ptr.vmem [resolvable:$true] %s2351_s5 }
 0xea9   :  { %p3075_p1 = scmp.lt.s32.totalorder %s2352_s5, %s2352_s5 }
 0xebe   :  { %2969 = vrot.lane.b32.xlu0 %v3348_v22, %s3102_s12  ;;  %s3070_s12 = scalar_lea.vmem %s2352_s5, 512 }
 0xebf   :  { %p3071_p0 = scmp.ne.s32.totalorder %s2352_s5, %s3070_s12  ;;  %p3076_p2 = scmp.lt.s32.totalorder %s3070_s12, %s3070_s12 }
 0xec1   :  { %p3077_p3 = por %p3076_p2, %p3075_p1 }
 0xec3   :  { %p3078_p4 = pnand %p3077_p3, %p3071_p0 }
 0xf31   :  { %v1580_v2 = vpop.xlane.xlu0 %1579 }
 0xf32   :  { %3038 = vrcp.f32 %v1580_v2  ;;  %v2366_v2 = vld [vmem:[%s3683_s1 + $0x40] sm:$0xff] }
 0xf35   :  { %v1577_v3 = vpop.xlane.xlu0 %1576 }
 0xf36   :  { %3040 = vrcp.f32 %v1577_v3 }
 0xf39   :  { %v2970_v6 = vpop.permute.xlu0 %2969 }
 0xf3a   :  { %v2972_v7 = vunpack.i.h.bf16 %v2970_v6  ;;  %v2971_v8 = vunpack.i.l.bf16 %v2970_v6 }
 0xf3c   :  { %v2824_v9 = vpack.c.bf16 %v2972_v7, %v2971_v8  ;;  %v3039_v11 = vpop.eup %3038  ;;  %v2367_v7 = vld [vmem:[%s3683_s1 + $0x48] sm:$0xff] }
 0xf3d   :  { %v1584_v17 = vmul.f32 %v3039_v11, %v3035_v0 }
 0xf3e   :  { %2826 = vmatprep.subr.msk.bf16.mxu1 %vm3254_vm2, %v2824_v9 }
 0xf40   :  { %v3041_v13 = vpop.eup %3040 }
 0xf41   :  { %v1583_v16 = vmul.f32 %v3041_v13, %v3037_v1  ;;  %v3067_v13 = vld [vmem:[%s3682_s0 + $0x8] sm:$0xff] }
 0xf43   :  { %2663 = vmatprep.mubr.msk.f32.mxu1 %vm333_vm3, %v1583_v16 }
 0xf44   :  { %2664 = vmatmul.mubr.msk.f32.vlgmr.msra.gmra.mrb[20].mxu1 %vm333_vm3, %v1584_v17 }
 0xf45   :  { %2829 = vmatpush3.bf16.xpose.msk.msra.mxu1 %vm3254_vm2, %v2824_v9  ;;  %2670 = vmatprep.mubr.msk.f32.mxu1 %vm249_vm1, %v1673_v18  ;;  %v3066_v9 = vld [vmem:[%s3682_s0] sm:$0xff] }
 0xf4c   :  { %2671 = vmatmul.mubr.msk.f32.vlgmr.msra.gmra.mrb[22].mxu1 %vm249_vm1, %v1675_v15 }
0x1017   :  { %v2665_v23 = vpop.f32.mrb[20].mxu1 }
0x1018   :  { %v1663_v24 = vpop.f32.mrb[21].mxu1 }
0x101f   :  { %v2672_v25 = vpop.f32.mrb[22].mxu1 }
0x1020   :  { %v1754_v26 = vpop.f32.mrb[23].mxu1  ;;  %v1766_v27 = vsel %vm333_vm3, %v2672_v25, -inf }
0x1021   :  { %1767 = vmax.xlane.f32.xlu0 %v1766_v27  ;;  %v1763_v28 = vsel %vm333_vm3, %v1754_v26, -inf }
0x1022   :  { %1764 = vmax.xlane.f32.xlu1 %v1763_v28 }
0x1033   :  { %2974 = vrot.lane.b32.xlu1 %v3348_v22, %s3104_s14 }
0x1037   :  { %1047 = vrot.lane.b32.xlu1 %v3324_v56, %s3105_s15 }
0x103b   :  { %1053 = vrot.lane.b32.xlu1 %v3330_v59, %s3106_s16 }
0x103f   :  { %1055 = vrot.lane.b32.xlu1 %v3328_v58, %s3106_s16 }
0x1043   :  { %1063 = vrot.lane.b32.xlu1 %v3362_v32, %s3107_s17 }
0x1047   :  { %1876 = vrot.lane.b32.xlu1 %v3410_v43, %s3105_s15 }
0x104b   :  { %1884 = vrot.lane.b32.xlu1 %v2665_v23, %s3106_s16 }
0x10ae   :  { %v1768_v19 = vpop.xlane.xlu0 %1767 }
0x10af   :  { %v1770_v22 = vsub.f32 %v2672_v25, %v1768_v19  ;;  %v1765_v10 = vpop.xlane.xlu1 %1764 }
0x10b0   :  { %v1769_v56 = vsub.f32 %v1754_v26, %v1765_v10 }
0x10b1   :  { %v1773_v29 = vmul.f32 1.442695, %v1770_v22 }
0x10b2   :  { %v1771_v30 = vmul.f32 1.442695, %v1769_v56 }
0x10b3   :  { %v2975_v31 = vpop.permute.xlu1 %2974 }
0x10b4   :  { %3042 = vpow2.f32 %v1771_v30  ;;  %v2977_v59 = vunpack.i.h.bf16 %v2975_v31  ;;  %v2976_v34 = vunpack.i.l.bf16 %v2975_v31 }
0x10b5   :  { %3044 = vpow2.f32 %v1773_v29 }
0x10b6   :  { %v2830_v58 = vpack.c.bf16 %v2977_v59, %v2976_v34 }
0x10b8   :  { %2831 = vmatprep.subr.bf16.mxu0 %v2830_v58 }
0x10b9   :  { %2833 = vmatpush3.bf16.msra.mxu0 %v2830_v58 }
0x10ba   :  { %2835 = vmatprep.subr.bf16.mxu0 %v2834_v40 }
0x10be   :  { %v3043_v32 = vpop.eup %3042 }
0x10bf   :  { %v1775_v35 = vsel %vm333_vm3, %v3043_v32, 0.0  ;;  %v3045_v36 = vpop.eup %3044 }
0x10c0   :  { %1776 = vadd.xlane.f32.xlu0 %v1775_v35  ;;  %v1778_v37 = vsel %vm333_vm3, %v3045_v36, 0.0 }
0x10c4   :  { %1779 = vadd.xlane.f32.xlu0 %v1778_v37 }
0x10da   :  { %1045 = vrot.lane.b32.xlu0 %v3326_v57, %s3105_s15  ;;  %v1048_v57 = vpop.permute.xlu1 %1047 }
0x10de   :  { %1061 = vrot.lane.b32.xlu0 %v3364_v33, %s3107_s17  ;;  %v1054_v43 = vpop.permute.xlu1 %1053  ;;  %v1905_v33 = vld [vmem:[%s3686_s4 + $0x18] sm:$0xff] }
0x10df   :  { %v2838_v51 = vpack.c.bf16 %v1905_v33, %v1904_v46 }
0x10e2   :  { %1874 = vrot.lane.b32.xlu0 %v3412_v14, %s3105_s15  ;;  %v1056_v49 = vpop.permute.xlu1 %1055 }
0x10e6   :  { %1882 = vrot.lane.b32.xlu0 %v1663_v24, %s3106_s16  ;;  %v1064_v54 = vpop.permute.xlu1 %1063 }
0x10ea   :  { %v1877_v15 = vpop.permute.xlu1 %1876 }
0x10eb   :  { %v1897_v28 = vsel %vm249_vm1, %v3386_v4, %v1877_v15 }
0x10ee   :  { %v1885_v24 = vpop.permute.xlu1 %1884 }
0x10ef   :  { %v1899_v10 = vsel %vm333_vm3, %v1897_v28, %v1885_v24 }
0x114d   :  { %v1777_v41 = vpop.xlane.xlu0 %1776 }
0x114e   :  { %3046 = vrcp.f32 %v1777_v41 }
0x1151   :  { %v1780_v42 = vpop.xlane.xlu0 %1779 }
0x1152   :  { %3048 = vrcp.f32 %v1780_v42 }
0x1155   :  { %v1046_v12 = vpop.permute.xlu0 %1045 }
0x1156   :  { %v1067_v14 = vsel %vm249_vm1, %v3294_v62, %v1046_v12  ;;  %v1068_v62 = vsel %vm249_vm1, %v3292_v61, %v1048_v57  ;;  %v3068_v57 = vld [vmem:[%s3682_s0 + $0x10] sm:$0xff] }
0x1157   :  { %v1069_v52 = vsel %vm333_vm3, %v1067_v14, %v1054_v43  ;;  %v1070_v55 = vsel %vm333_vm3, %v1068_v62, %v1056_v49  ;;  %v3069_v43 = vld [vmem:[%s3682_s0 + $0x18] sm:$0xff]  ;;  %v2084_v49 = vld [vmem:[%s3688_s6 + $0x10] sm:$0xff] }
0x1158   :  { %v3047_v44 = vpop.eup %3046  ;;  %v1073_v60 = vsel %vm1071_vm4, %v1070_v55, %v1064_v54 }
0x1159   :  { %v1783_v45 = vmul.f32 %v3047_v44, %v3043_v32  ;;  %v1062_v48 = vpop.permute.xlu0 %1061  ;;  %v2369_v32 = vld [vmem:[%s3683_s1 + $0x58] sm:$0xff] }
0x115a   :  { %v1072_v53 = vsel %vm1071_vm4, %v1069_v52, %v1062_v48  ;;  %v2083_v48 = vld [vmem:[%s3688_s6 + $0x8] sm:$0xff] }
0x115b   :  { %2677 = vmatprep.mubr.msk.f32.mxu0 %vm333_vm3, %v1783_v45 }
0x115c   :  { %v3049_v47 = vpop.eup %3048 }
0x115d   :  { %v1784_v50 = vmul.f32 %v3049_v47, %v3045_v36  ;;  %v1875_v23 = vpop.permute.xlu0 %1874  ;;  %v2368_v36 = vld [vmem:[%s3683_s1 + $0x50] sm:$0xff]  ;;  %v2082_v47 = vld [vmem:[%s3688_s6] sm:$0xff] }
0x115e   :  { %v1896_v26 = vsel %vm249_vm1, %v3388_v5, %v1875_v23 }
0x115f   :  { %2678 = vmatmul.mubr.msk.f32.vlgmr.msra.gmra.mrb[10].mxu0 %vm333_vm3, %v1784_v50  ;;  %v2842_v50 = vpack.c.bf16 %v2083_v48, %v2082_v47 }
0x1160   :  { %2837 = vmatpush3.bf16.msra.mxu0 %v2834_v40  ;;  %2688 = vmatprep.mubr.msk.f32.mxu0 %vm69_vm0, %v1072_v53 }
0x1161   :  { %2839 = vmatprep.subr.bf16.mxu0 %v2838_v51  ;;  %v1883_v25 = vpop.permute.xlu0 %1882  ;;  %2843 = vmatprep.subr.bf16.mxu1 %v2842_v50 }
0x1162   :  { %v1898_v19 = vsel %vm333_vm3, %v1896_v26, %v1883_v25  ;;  %2845 = vmatpush3.bf16.msra.mxu1 %v2842_v50  ;;  %v2370_v26 = vld [vmem:[%s3683_s1 + $0x60] sm:$0xff] }
0x1164   :  { %2841 = vmatpush3.bf16.msra.mxu0 %v2838_v51  ;;  %v2085_v51 = vld [vmem:[%s3688_s6 + $0x18] sm:$0xff] }
0x1165   :  { %v2846_v52 = vpack.c.bf16 %v2085_v51, %v2084_v49 }
0x1167   :  { %2689 = vmatmul.mubr.msk.f32.vlgmr.msra.gmra.mrb[12].mxu0 %vm69_vm0, %v1073_v60  ;;  %2847 = vmatprep.subr.bf16.mxu1 %v2846_v52 }
0x1168   :  { %2849 = vmatpush3.bf16.msra.mxu1 %v2846_v52 }
0x1232   :  { %v2679_v63 = vpop.f32.mrb[10].mxu0 }
0x1233   :  { %1892 = vrot.lane.b32.xlu1 %v2679_v63, %s3107_s17  ;;  %v1863_v0 = vpop.f32.mrb[11].mxu0 }
0x1234   :  { %1890 = vrot.lane.b32.xlu0 %v1863_v0, %s3107_s17 }
0x123a   :  { %v2690_v21 = vpop.f32.mrb[12].mxu0 }
0x123b   :  { %v1991_v1 = vpop.f32.mrb[13].mxu0  ;;  %v1997_v3 = vadd.f32 %v2690_v21, %v2435_v20 }
0x123c   :  { %v1992_v61 = vadd.f32 %v2435_v20, %v1991_v1 }
0x123d   :  { %v2011_v8 = vmul.f32 %v2367_v7, %v1997_v3 }
0x123e   :  { %v2010_v6 = vmul.f32 %v2366_v2, %v1992_v61 }
0x123f   :  { %v3501_v16 = vadd.f32 %v3067_v13, %v2011_v8  ;;  %v2375_v13 = vld [vmem:[%s3683_s1 + $0x88] sm:$0xff] }
0x1240   :  { %v3496_v11 = vadd.f32 %v3066_v9, %v2010_v6  ;;  %v2071_v15 = vadd.f32 1.0, %v2375_v13 }
0x1241   :  { %v2021_v18 = vsel %vm69_vm0, %v3501_v16, 0.0 }
0x1242   :  { %v2018_v17 = vsel %vm69_vm0, %v3496_v11, 0.0 }
0x1253   :  { %2019 = vadd.xlane.f32.xlu0 %v2018_v17  ;;  %v2374_v17 = vld [vmem:[%s3683_s1 + $0x80] sm:$0xff] }
0x1254   :  { %v2070_v23 = vadd.f32 1.0, %v2374_v17 }
0x1257   :  { %2022 = vadd.xlane.f32.xlu1 %v2021_v18 }
0x12a5   :  { %v1893_v27 = vpop.permute.xlu1 %1892 }
0x12a6   :  { %v1891_v22 = vpop.permute.xlu0 %1890  ;;  %v1901_v29 = vsel %vm1071_vm4, %v1899_v10, %v1893_v27 }
0x12a7   :  { %v1900_v56 = vsel %vm1071_vm4, %v1898_v19, %v1891_v22  ;;  %v2371_v19 = vld [vmem:[%s3683_s1 + $0x68] sm:$0xff] }
0x12a8   :  { %2691 = vmatprep.mubr.msk.f32.mxu0 %vm69_vm0, %v1900_v56  ;;  %v2226_v56 = vld [vmem:[%s3690_s8] sm:$0xff] }
0x12a9   :  { %2692 = vmatmul.mubr.msk.f32.gmra.mrb[14].mxu0 %vm69_vm0, %v1901_v29  ;;  %v2227_v29 = vld [vmem:[%s3690_s8 + $0x8] sm:$0xff] }
0x12e0   :  { %v2020_v58 = vpop.xlane.xlu0 %2019 }
0x12e1   :  { %v2030_v39 = vmul.f32 0.03125, %v2020_v58 }
0x12e3   :  { %v2034_v12 = vsub.f32 %v3496_v11, %v2030_v39 }
0x12e4   :  { %v2023_v30 = vpop.xlane.xlu1 %2022 }
0x12e5   :  { %v2031_v31 = vmul.f32 0.03125, %v2023_v30  ;;  %v2038_v33 = vmul.f32 %v2034_v12, %v2034_v12  ;;  %v2850_v30 = vpack.c.bf16 %v2227_v29, %v2226_v56 }
0x12e7   :  { %v2035_v5 = vsub.f32 %v3501_v16, %v2031_v31  ;;  %v2042_v14 = vsel %vm69_vm0, %v2038_v33, 0.0  ;;  %2851 = vmatprep.subr.bf16.mxu0 %v2850_v30  ;;  %v2228_v31 = vld [vmem:[%s3690_s8 + $0x10] sm:$0xff]  ;;  %v2241_v33 = vld [vmem:[%s3690_s8 + $0x78] sm:$0xff] }
0x12e8   :  { %2853 = vmatpush3.bf16.msra.mxu0 %v2850_v30 }
0x12e9   :  { %v2039_v59 = vmul.f32 %v2035_v5, %v2035_v5 }
0x12eb   :  { %v2045_v4 = vsel %vm69_vm0, %v2039_v59, 0.0 }
0x12ec   :  { %2046 = vadd.xlane.f32.xlu1 %v2045_v4  ;;  %v2230_v4 = vld [vmem:[%s3690_s8 + $0x20] sm:$0xff] }
0x1379   :  { %v2047_v53 = vpop.xlane.xlu1 %2046 }
0x137a   :  { %v2055_v54 = vmul.f32 0.03125, %v2047_v53  ;;  %v2376_v53 = vld [vmem:[%s3683_s1 + $0x90] sm:$0xff] }
0x137c   :  { %v2693_v34 = vpop.f32.mrb[14].mxu0  ;;  %v2059_v63 = vadd.f32 1e-06, %v2055_v54  ;;  %v2072_v54 = vadd.f32 1.0, %v2376_v53  ;;  %v2379_v53 = vld [vmem:[%s3683_s1 + $0xa8] sm:$0xff] }
0x137d   :  { %v2007_v35 = vadd.f32 %v2693_v34, %v2435_v20  ;;  %v2001_v37 = vpop.f32.mrb[15].mxu0  ;;  %v2231_v34 = vld [vmem:[%s3690_s8 + $0x28] sm:$0xff] }
0x137e   :  { %v2002_v38 = vadd.f32 %v2435_v20, %v2001_v37  ;;  %3050 = vrsqrt.f32 %v2059_v63  ;;  %v2858_v58 = vpack.c.bf16 %v2231_v34, %v2230_v4  ;;  %v2234_v37 = vld [vmem:[%s3690_s8 + $0x40] sm:$0xff] }
0x137f   :  { %v2013_v40 = vmul.f32 %v2369_v32, %v2007_v35  ;;  %v2232_v32 = vld [vmem:[%s3690_s8 + $0x30] sm:$0xff]  ;;  %v2233_v35 = vld [vmem:[%s3690_s8 + $0x38] sm:$0xff] }
0x1380   :  { %v2012_v41 = vmul.f32 %v2368_v36, %v2002_v38  ;;  %v2862_v36 = vpack.c.bf16 %v2233_v35, %v2232_v32  ;;  %v2235_v38 = vld [vmem:[%s3690_s8 + $0x48] sm:$0xff] }
0x1381   :  { %v3534_v44 = vadd.f32 %v3069_v43, %v2013_v40  ;;  %v2866_v39 = vpack.c.bf16 %v2235_v38, %v2234_v37  ;;  %v2236_v40 = vld [vmem:[%s3690_s8 + $0x50] sm:$0xff]  ;;  %v2239_v43 = vld [vmem:[%s3690_s8 + $0x68] sm:$0xff] }
0x1382   :  { %v3528_v42 = vadd.f32 %v3068_v57, %v2012_v41  ;;  %v2237_v41 = vld [vmem:[%s3690_s8 + $0x58] sm:$0xff] }
0x1383   :  { %v2027_v46 = vsel %vm69_vm0, %v3534_v44, 0.0  ;;  %v2870_v57 = vpack.c.bf16 %v2237_v41, %v2236_v40 }
0x1384   :  { %v2024_v45 = vsel %vm69_vm0, %v3528_v42, 0.0 }
0x1385   :  { %2025 = vadd.xlane.f32.xlu0 %v2024_v45 }
0x1388   :  { %v3051_v9 = vpop.eup %3050 }
0x1389   :  { %2028 = vadd.xlane.f32.xlu0 %v2027_v46  ;;  %v2067_v18 = vmul.f32 %v3051_v9, %v2035_v5  ;;  %v2229_v5 = vld [vmem:[%s3690_s8 + $0x18] sm:$0xff]  ;;  %v2240_v46 = vld [vmem:[%s3690_s8 + $0x70] sm:$0xff] }
0x138a   :  { %v2854_v59 = vpack.c.bf16 %v2229_v5, %v2228_v31 }
0x138b   :  { %v2075_v27 = vmul.f32 %v2071_v15, %v2067_v18 }
0x138c   :  { %2855 = vmatprep.subr.bf16.mxu0 %v2854_v59 }
0x138d   :  { %2043 = vadd.xlane.f32.xlu0 %v2042_v14  ;;  %v2079_v10 = vadd.f32 %v2371_v19, %v2075_v27  ;;  %2857 = vmatpush3.bf16.msra.mxu0 %v2854_v59  ;;  %v2878_v14 = vpack.c.bf16 %v2241_v33, %v2240_v46 }
0x138e   :  { %2859 = vmatprep.subr.bf16.mxu0 %v2858_v58 }
0x1391   :  { %2861 = vmatpush3.bf16.msra.mxu0 %v2858_v58 }
0x1392   :  { %2863 = vmatprep.subr.bf16.mxu0 %v2862_v36 }
0x1395   :  { %2865 = vmatpush3.bf16.msra.mxu0 %v2862_v36 }
0x1396   :  { %2867 = vmatprep.subr.bf16.mxu0 %v2866_v39 }
0x1399   :  { %2869 = vmatpush3.bf16.msra.mxu0 %v2866_v39 }
0x139a   :  { %2871 = vmatprep.subr.bf16.mxu0 %v2870_v57 }
0x139d   :  { %2873 = vmatpush3.bf16.msra.mxu0 %v2870_v57 }
0x1412   :  { %v2026_v62 = vpop.xlane.xlu0 %2025 }
0x1413   :  { %v2032_v55 = vmul.f32 0.03125, %v2026_v62 }
0x1415   :  { %v3554_v60 = vsub.f32 %v3528_v42, %v2032_v55  ;;  %v2377_v55 = vld [vmem:[%s3683_s1 + $0x98] sm:$0xff] }
0x1416   :  { %v2029_v0 = vpop.xlane.xlu0 %2028 }
0x1417   :  { %v2033_v21 = vmul.f32 0.03125, %v2029_v0  ;;  %v2040_v1 = vmul.f32 %v3554_v60, %v3554_v60  ;;  %v2372_v0 = vld [vmem:[%s3683_s1 + $0x70] sm:$0xff] }
0x1419   :  { %v3559_v20 = vsub.f32 %v3534_v44, %v2033_v21  ;;  %v2048_v61 = vsel %vm69_vm0, %v2040_v1, 0.0  ;;  %v2073_v1 = vadd.f32 1.0, %v2377_v55  ;;  %v2378_v55 = vld [vmem:[%s3683_s1 + $0xa0] sm:$0xff] }
0x141a   :  { %2049 = vadd.xlane.f32.xlu0 %v2048_v61  ;;  %v2044_v2 = vpop.xlane.xlu0 %2043 }
0x141b   :  { %v2054_v3 = vmul.f32 0.03125, %v2044_v2  ;;  %v2041_v6 = vmul.f32 %v3559_v20, %v3559_v20 }
0x141d   :  { %v2058_v7 = vadd.f32 1e-06, %v2054_v3  ;;  %v2051_v8 = vsel %vm69_vm0, %v2041_v6, 0.0  ;;  %v2373_v6 = vld [vmem:[%s3683_s1 + $0x78] sm:$0xff] }
0x141e   :  { %2052 = vadd.xlane.f32.xlu1 %v2051_v8 }
0x141f   :  { %3052 = vrsqrt.f32 %v2058_v7 }
0x1429   :  { %v3053_v24 = vpop.eup %3052 }
0x142a   :  { %v2066_v25 = vmul.f32 %v3053_v24, %v2034_v12  ;;  %v2238_v12 = vld [vmem:[%s3690_s8 + $0x60] sm:$0xff] }
0x142b   :  { %v2874_v45 = vpack.c.bf16 %v2239_v43, %v2238_v12 }
0x142c   :  { %v2074_v28 = vmul.f32 %v2070_v23, %v2066_v25 }
0x142d   :  { %2875 = vmatprep.subr.bf16.mxu0 %v2874_v45 }
0x142e   :  { %v2078_v22 = vadd.f32 %v2370_v26, %v2074_v28  ;;  %2877 = vmatpush3.bf16.msra.mxu0 %v2874_v45 }
0x142f   :  { %2879 = vmatprep.subr.bf16.mxu0 %v2878_v14 }
0x1430   :  { %2702 = vmatprep.mubr.msk.f32.mxu1 %vm69_vm0, %v2078_v22 }
0x1431   :  { %2703 = vmatmul.mubr.msk.f32.vlgmr.msra.gmra.mrb[24].mxu1 %vm69_vm0, %v2079_v10 }
0x1432   :  { %2881 = vmatpush3.bf16.msra.mxu0 %v2878_v14 }
0x14a7   :  { %v2050_v47 = vpop.xlane.xlu0 %2049 }
0x14a8   :  { %v2056_v48 = vmul.f32 0.03125, %v2050_v47 }
0x14aa   :  { %v2060_v49 = vadd.f32 1e-06, %v2056_v48 }
0x14ab   :  { %v2053_v50 = vpop.xlane.xlu1 %2052 }
0x14ac   :  { %3054 = vrsqrt.f32 %v2060_v49  ;;  %v2057_v51 = vmul.f32 0.03125, %v2053_v50 }
0x14ae   :  { %v2061_v52 = vadd.f32 1e-06, %v2057_v51 }
0x14b0   :  { %3056 = vrsqrt.f32 %v2061_v52  ;;  %v2445_v52 = vld [vmem:[%s3691_s9] ss:$0 sm:$0xff] }
0x14b6   :  { %v3055_v62 = vpop.eup %3054 }
0x14b7   :  { %v2068_v63 = vmul.f32 %v3055_v62, %v3554_v60  ;;  %v2440_v60 = vld [vmem:[%s3689_s7] ss:$0 sm:$0xff] }
0x14b9   :  { %v2076_v21 = vmul.f32 %v2072_v54, %v2068_v63 }
0x14ba   :  { %v3057_v61 = vpop.eup %3056 }
0x14bb   :  { %v2080_v2 = vadd.f32 %v2372_v0, %v2076_v21  ;;  %v2069_v3 = vmul.f32 %v3057_v61, %v3559_v20 }
0x14bd   :  { %2705 = vmatprep.mubr.msk.f32.mxu1 %vm69_vm0, %v2080_v2  ;;  %v2077_v7 = vmul.f32 %v2073_v1, %v2069_v3  ;;  %v2381_v3 = vld [vmem:[%s3683_s1 + $0xb8] sm:$0xff] }
0x14bf   :  { %v2081_v8 = vadd.f32 %v2373_v6, %v2077_v7 }
0x14c1   :  { %2706 = vmatmul.mubr.msk.f32.gmra.mrb[26].mxu1 %vm69_vm0, %v2081_v8  ;;  %v2380_v8 = vld [vmem:[%s3683_s1 + $0xb0] sm:$0xff] }
0x1504   :  { %v2704_v9 = vpop.f32.mrb[24].mxu1 }
0x1505   :  { %v2177_v13 = vadd.f32 %v2704_v9, %v2440_v60  ;;  %v2171_v17 = vpop.f32.mrb[25].mxu1 }
0x1506   :  { %v2172_v18 = vadd.f32 %v2440_v60, %v2171_v17 }
0x1507   :  { %v2195_v15 = vmul.f32 0.044715, %v2177_v13  ;;  %v2191_v5 = vmul.f32 0.5, %v2177_v13 }
0x1508   :  { %v2194_v20 = vmul.f32 0.044715, %v2172_v18  ;;  %v2190_v30 = vmul.f32 0.5, %v2172_v18 }
0x1509   :  { %v2199_v23 = vmul.f32 %v2195_v15, %v2177_v13 }
0x150a   :  { %v2198_v24 = vmul.f32 %v2194_v20, %v2172_v18 }
0x150b   :  { %v2203_v25 = vmul.f32 %v2199_v23, %v2177_v13 }
0x150c   :  { %v2202_v26 = vmul.f32 %v2198_v24, %v2172_v18 }
0x150d   :  { %v2207_v27 = vadd.f32 %v2203_v25, %v2177_v13 }
0x150e   :  { %v2206_v28 = vadd.f32 %v2202_v26, %v2172_v18 }
0x150f   :  { %v2211_v19 = vmul.f32 0.7978846, %v2207_v27 }
0x1510   :  { %v2210_v22 = vmul.f32 0.7978846, %v2206_v28 }
0x1511   :  { %3058 = vtanh.f32 %v2211_v19 }
0x1512   :  { %3060 = vtanh.f32 %v2210_v22 }
0x151b   :  { %v3059_v10 = vpop.eup %3058 }
0x151c   :  { %v3061_v56 = vpop.eup %3060  ;;  %v2219_v29 = vadd.f32 1.0, %v3059_v10 }
0x151d   :  { %v2218_v31 = vadd.f32 1.0, %v3061_v56 }
0x151e   :  { %v2223_v4 = vmul.f32 %v2219_v29, %v2191_v5 }
0x151f   :  { %v2222_v59 = vmul.f32 %v2218_v31, %v2190_v30 }
0x1521   :  { %2740 = vmatprep.mubr.f32.mxu0 %v2222_v59 }
0x1522   :  { %2741 = vmatmul.mubr.f32.vlgmr.msra.gmra.mrb[16].mxu0 %v2223_v4 }
0x1594   :  { %v2707_v34 = vpop.f32.mrb[26].mxu1 }
0x1595   :  { %v2187_v58 = vadd.f32 %v2707_v34, %v2440_v60  ;;  %v2181_v32 = vpop.f32.mrb[27].mxu1 }
0x1596   :  { %v2182_v35 = vadd.f32 %v2440_v60, %v2181_v32 }
0x1597   :  { %v2197_v36 = vmul.f32 0.044715, %v2187_v58  ;;  %v2193_v49 = vmul.f32 0.5, %v2187_v58 }
0x1598   :  { %v2196_v37 = vmul.f32 0.044715, %v2182_v35  ;;  %v2192_v47 = vmul.f32 0.5, %v2182_v35 }
0x1599   :  { %v2201_v38 = vmul.f32 %v2197_v36, %v2187_v58 }
0x159a   :  { %v2200_v39 = vmul.f32 %v2196_v37, %v2182_v35 }
0x159b   :  { %v2205_v40 = vmul.f32 %v2201_v38, %v2187_v58 }
0x159c   :  { %v2204_v41 = vmul.f32 %v2200_v39, %v2182_v35 }
0x159d   :  { %v2209_v57 = vadd.f32 %v2205_v40, %v2187_v58 }
0x159e   :  { %v2208_v12 = vadd.f32 %v2204_v41, %v2182_v35 }
0x159f   :  { %v2213_v43 = vmul.f32 0.7978846, %v2209_v57 }
0x15a0   :  { %v2212_v45 = vmul.f32 0.7978846, %v2208_v12 }
0x15a1   :  { %3062 = vtanh.f32 %v2213_v43 }
0x15a2   :  { %3064 = vtanh.f32 %v2212_v45 }
0x15ab   :  { %v3063_v46 = vpop.eup %3062 }
0x15ac   :  { %v3065_v33 = vpop.eup %3064  ;;  %v2221_v14 = vadd.f32 1.0, %v3063_v46 }
0x15ad   :  { %v2220_v48 = vadd.f32 1.0, %v3065_v33 }
0x15ae   :  { %v2225_v51 = vmul.f32 %v2221_v14, %v2193_v49 }
0x15af   :  { %v2224_v50 = vmul.f32 %v2220_v48, %v2192_v47 }
0x15b1   :  { %2743 = vmatprep.mubr.f32.mxu0 %v2224_v50 }
0x15b2   :  { %2744 = vmatmul.mubr.f32.gmra.mrb[18].mxu0 %v2225_v51 }
0x15f5   :  { %v2742_v54 = vpop.f32.mrb[16].mxu0 }
0x15f6   :  { %v2321_v62 = vadd.f32 %v2742_v54, %v2445_v52  ;;  %v2315_v63 = vpop.f32.mrb[17].mxu0 }
0x15f7   :  { %v2316_v0 = vadd.f32 %v2445_v52, %v2315_v63 }
0x15f8   :  { %v2335_v21 = vmul.f32 %v2379_v53, %v2321_v62 }
0x15f9   :  { %v2334_v1 = vmul.f32 %v2378_v55, %v2316_v0 }
0x15fa   :  { %v2339_v61 = vadd.f32 %v2335_v21, %v3501_v16 }
0x15fb   :  { %v2338_v2 = vadd.f32 %v2334_v1, %v3496_v11 }
0x15fc   :  { %2343 = vst.msk [vmem:[#allocation2 + $0x8] sm:$0xff] %vm69_vm0, %v2339_v61 }
0x15fd   :  { %2342 = vst.msk [vmem:[#allocation2] sm:$0xff] %vm69_vm0, %v2338_v2 }
0x1685   :  { %v2745_v6 = vpop.f32.mrb[18].mxu0 }
0x1686   :  { %v2331_v7 = vadd.f32 %v2745_v6, %v2445_v52  ;;  %v2325_v60 = vpop.f32.mrb[19].mxu0 }
0x1687   :  { %v2326_v9 = vadd.f32 %v2445_v52, %v2325_v60 }
0x1688   :  { %v2337_v13 = vmul.f32 %v2381_v3, %v2331_v7 }
0x1689   :  { %v2336_v11 = vmul.f32 %v2380_v8, %v2326_v9 }
0x168a   :  { %v2341_v16 = vadd.f32 %v2337_v13, %v3534_v44 }
0x168b   :  { %v2340_v17 = vadd.f32 %v2336_v11, %v3528_v42 }
0x168c   :  { %2345 = vst.msk [vmem:[#allocation2 + $0x18] sm:$0xff] %vm69_vm0, %v2341_v16 }
0x168d   :  { %2344 = vst.msk [vmem:[#allocation2 + $0x10] sm:$0xff] %vm69_vm0, %v2340_v17 }
0x168e   :  { %3081 = shalt.err (!%p3078_p4)
}
0x168f   :  { %s3082_s14 = scalar_lea.hbm %s3692_s10, 512 }
0x1690   :  { %p3083_p5 = scmp.ne.s32.totalorder %s3692_s10, %s3082_s14  ;;  %p3086_p6 = scmp.lt.u32.totalorder %s3082_s14, %s3692_s10 }
0x1692   :  { %p3088_p7 = pnand %p3086_p6, %p3083_p5 }
0x1694   :  { %3091 = shalt.err (!%p3088_p7)
}
0x1695   :  { %s3109_s20 = smov 128  }
0x1696   :  { %2357 = dma.vmem_to_hbm [thread:$0]  %s2352_s5, 512, %s3692_s10, [#allocation3], %s3109_s20, %s3109_s20, %s3105_s15  }
0x1697   :  { %3092 = dma.done.wait [#allocation3], 512  }
0x1698   :  { %3093 = vsyncadd [#allocation3], 4294966784 }
0x1699   :  { %2361 = vsyncpa [#allocation3], 1 }

</bundles_post_ra>
